<compile_context>
chip_gen: v7x
topology: tpu7x:2x2x1
jax: 0.10.0
libtpu: 0.0.40
codegen_flags: <defaults>
</compile_context>

<pallas_src>
import math
import functools

import jax
import jax.numpy as jnp
from jax import lax
from jax.experimental import pallas as pl
from jax.experimental.pallas import tpu as pltpu

_INV_SQRT2 = 1.0 / math.sqrt(2.0)


def _round_up(a, b):
    return -(-a // b) * b


def _vmem_limit_bytes():
    """VMEM limit with headroom for compiler scratch / double buffers."""
    cap = 64 * 1024 * 1024  # conservative default = v7x per-TC physical VMEM
    try:
        cap = int(pltpu.get_tpu_info().vmem_capacity_bytes)
    except Exception:
        pass
    # ~75% of physical, capped at 96 MiB (v5e/v6e have 128 MiB, v7x 64 MiB).
    return min((cap * 3) // 4, 96 * 1024 * 1024)


def _gelu(h, approx):
    if approx:
        # tanh-approx GELU -> EUP slot (keeps the VALU free).
        return jax.nn.gelu(h, approximate=True)
    # Exact GELU (nn.GELU() default), erf polynomial on the VALU.
    return 0.5 * h * (1.0 + lax.erf(h * _INV_SQRT2))


# ---------------------------------------------------------------------------
# Kernels
# ---------------------------------------------------------------------------
def _mlp_resident_kernel(x_ref, w1_ref, b1_ref, w2_ref, b2_ref, out_ref, *,
                         approx_gelu):
    """Weight-resident path: one (TM, Dp) row tile per grid step, full H.

    x_ref : (TM, Dp) f32      w1_ref: (Dp, Hp) bf16   b1_ref: (1, Hp) f32
    w2_ref: (Hp, Dp) bf16     b2_ref: (1, Dp)  f32    out_ref: (TM, Dp) f32
    """
    x = x_ref[...].astype(jnp.bfloat16)
    h = jnp.dot(x, w1_ref[...], preferred_element_type=jnp.float32)
    h = h + b1_ref[...]
    h = _gelu(h, approx_gelu)
    y = jnp.dot(h.astype(jnp.bfloat16), w2_ref[...],
                preferred_element_type=jnp.float32) + b2_ref[...]
    out_ref[...] = y.astype(out_ref.dtype)


def _mlp_streaming_kernel(x_ref, w1_ref, b1_ref, w2_ref, b2_ref, out_ref, *,
                          approx_gelu):
    """Hidden-tiled path for large H: accumulate into the resident out tile.

    Grid = (Mp//TM, Hp//TH); the out BlockSpec returns (i, 0) for all j, so
    out_ref stays VMEM-resident across the j reduction (no scratch needed).
    """
    j = pl.program_id(1)

    @pl.when(j == 0)
    def _init():
        out_ref[...] = jnp.broadcast_to(b2_ref[...], out_ref.shape)

    x = x_ref[...].astype(jnp.bfloat16)
    h = jnp.dot(x, w1_ref[...], preferred_element_type=jnp.float32)
    h = h + b1_ref[...]
    h = _gelu(h, approx_gelu)
    out_ref[...] += jnp.dot(h.astype(jnp.bfloat16), w2_ref[...],
                            preferred_element_type=jnp.float32)


# ---------------------------------------------------------------------------
# Host-side wrappers
# ---------------------------------------------------------------------------
def prepare_params(params):
    """Pad to TPU-friendly shapes and cast to MXU dtypes ONCE (hoisted)."""
    w1, b1, w2, b2 = params["w1"], params["b1"], params["w2"], params["b2"]
    D, H = w1.shape
    Dp = _round_up(D, 128)
    Hp = _round_up(H, 256)  # multiple of 256: fills the 256-wide MXU on v6e/v7x
    w1p = jnp.pad(w1, ((0, Dp - D), (0, Hp - H)))
    w2p = jnp.pad(w2, ((0, Hp - H), (0, Dp - D)))
    b1p = jnp.pad(b1.reshape(1, -1), ((0, 0), (0, Hp - H)))
    b2p = jnp.pad(b2.reshape(1, -1), ((0, 0), (0, Dp - D)))
    return {
        "w1": w1p.astype(jnp.bfloat16),
        "b1": b1p.astype(jnp.float32),
        "w2": w2p.astype(jnp.bfloat16),
        "b2": b2p.astype(jnp.float32),
        "d_model": D,
        "hidden": H,
    }


def cnn_forward(x, prepared, *, tm=512, th=512, approx_gelu=True,
                force_streaming=False):
    """Fused MLP forward.  x: (..., d_model).  Returns same shape/dtype."""
    D = prepared["d_model"]
    Dp, Hp = prepared["w1"].shape
    orig_shape = x.shape
    M = int(math.prod(orig_shape[:-1]))

    # Row tiling: big tiles (arithmetic intensity on the weight stream = TM
    # flops/byte), Mp rounded to 16 for bf16 sublane packing.
    if M <= tm:
        tm_eff = max(16, _round_up(M, 16))
        Mp = tm_eff
    else:
        tm_eff = tm
        Mp = _round_up(M, tm_eff)

    vmem_limit = _vmem_limit_bytes()

    # VMEM footprint estimate for the weight-resident path (x/out are
    # double-buffered by the pipeline; weights counted x2 for buffering too).
    resident_bytes = (
        2 * (2 * Dp * Hp * 2)            # W1 + W2, bf16, x2 buffers
        + 2 * tm_eff * Dp * 4            # x tile, f32, x2 buffers
        + 2 * tm_eff * Dp * 4            # out tile, f32, x2 buffers
        + tm_eff * Hp * 6                # h intermediate (f32 + bf16 copy)
    )
    use_resident = (not force_streaming) and (resident_bytes <= (vmem_limit * 4) // 5)

    # Pad x (rows + lane dim); kept f32, cast to bf16 inside the kernel.
    x2 = x.reshape(M, D).astype(jnp.float32)
    if (Mp, Dp) != (M, D):
        x2 = jnp.pad(x2, ((0, Mp - M), (0, Dp - D)))

    w1_bf, b1_f32 = prepared["w1"], prepared["b1"]
    w2_bf, b2_f32 = prepared["w2"], prepared["b2"]

    compiler_params_1d = pltpu.CompilerParams(
        dimension_semantics=("parallel",), vmem_limit_bytes=vmem_limit)
    compiler_params_2d = pltpu.CompilerParams(
        dimension_semantics=("parallel", "arbitrary"),
        vmem_limit_bytes=vmem_limit)

    if use_resident:
        grid = (Mp // tm_eff,)
        out_padded = pl.pallas_call(
            functools.partial(_mlp_resident_kernel, approx_gelu=approx_gelu),
            out_shape=jax.ShapeDtypeStruct((Mp, Dp), jnp.float32),
            grid_spec=pltpu.PrefetchScalarGridSpec(
                num_scalar_prefetch=0,
                grid=grid,
                in_specs=[
                    pl.BlockSpec((tm_eff, Dp), lambda i: (i, 0)),  # x row tile
                    pl.BlockSpec((Dp, Hp), lambda i: (0, 0)),      # W1 resident
                    pl.BlockSpec((1, Hp), lambda i: (0, 0)),       # b1
                    pl.BlockSpec((Hp, Dp), lambda i: (0, 0)),      # W2 resident
                    pl.BlockSpec((1, Dp), lambda i: (0, 0)),       # b2
                ],
                out_specs=pl.BlockSpec((tm_eff, Dp), lambda i: (i, 0)),
            ),
            compiler_params=compiler_params_1d,
        )(x2, w1_bf, b1_f32, w2_bf, b2_f32)
    else:
        th_eff = th if Hp % th == 0 else 256  # Hp is a multiple of 256
        grid = (Mp // tm_eff, Hp // th_eff)
        out_padded = pl.pallas_call(
            functools.partial(_mlp_streaming_kernel, approx_gelu=approx_gelu),
            out_shape=jax.ShapeDtypeStruct((Mp, Dp), jnp.float32),
            grid_spec=pltpu.PrefetchScalarGridSpec(
                num_scalar_prefetch=0,
                grid=grid,
                in_specs=[
                    pl.BlockSpec((tm_eff, Dp), lambda i, j: (i, 0)),   # x (resident over j)
                    pl.BlockSpec((Dp, th_eff), lambda i, j: (0, j)),   # W1 hidden tile
                    pl.BlockSpec((1, th_eff), lambda i, j: (0, j)),    # b1 hidden tile
                    pl.BlockSpec((th_eff, Dp), lambda i, j: (j, 0)),   # W2 hidden tile
                    pl.BlockSpec((1, Dp), lambda i, j: (0, 0)),        # b2
                ],
                out_specs=pl.BlockSpec((tm_eff, Dp), lambda i, j: (i, 0)),
            ),
            compiler_params=compiler_params_2d,
        )(x2, w1_bf, b1_f32, w2_bf, b2_f32)

    return out_padded[:M, :D].reshape(orig_shape).astype(x.dtype)


# ---------------------------------------------------------------------------
# References / init / demo
# ---------------------------------------------------------------------------
def reference_cnn(x, params, *, approx_gelu=True, emulate_bf16=False):
    """Pure-JAX reference of the PyTorch forward (dropout = identity / eval)."""
    w1, b1, w2, b2 = params["w1"], params["b1"], params["w2"], params["b2"]
    if emulate_bf16:
        xe = x.astype(jnp.bfloat16).astype(jnp.float32)
        w1e = w1.astype(jnp.bfloat16).astype(jnp.float32)
        w2e = w2.astype(jnp.bfloat16).astype(jnp.float32)
        h = xe @ w1e + b1
        h = _gelu(h, approx_gelu)
        h = h.astype(jnp.bfloat16).astype(jnp.float32)
        return h @ w2e + b2
    h = x @ w1 + b1
    h = _gelu(h, approx_gelu)
    return h @ w2 + b2


def init_params(key, d_model, hidden_dim):
    ks = jax.random.split(key, 4)
    s = 0.05
    return {
        "w1": s * jax.random.normal(ks[0], (d_model, hidden_dim), jnp.float32),
        "b1": s * jax.random.normal(ks[1], (1, hidden_dim), jnp.float32),
        "w2": s * jax.random.normal(ks[2], (hidden_dim, d_model), jnp.float32),
        "b2": s * jax.random.normal(ks[3], (1, d_model), jnp.float32),
    }


if __name__ == "__main__":
    # Small ViT-ish shapes: (batch, seq, d_model), hidden = 2 * d_model.
    B, S, D, H = 4, 64, 128, 256

    key = jax.random.PRNGKey(0)
    kx, kp = jax.random.split(key)
    x = jax.random.normal(kx, (B, S, D), jnp.float32)
    params = init_params(kp, D, H)
    prepared = prepare_params(params)   # pad + cast once (hoisted out of forward)

    # Default (weight-resident) path.
    out = jax.block_until_ready(cnn_forward(x, prepared))
    assert out.shape == (B, S, D)

    # Also exercise the streaming (hidden-tiled) fallback and check consistency.
    out_stream = jax.block_until_ready(cnn_forward(x, prepared, force_streaming=True))
    assert jnp.allclose(out, out_stream, rtol=1e-3, atol=1e-3), \
        "resident vs streaming path mismatch"

    # Tight check vs a reference emulating the kernel's bf16 MXU operands.
    ref_bf16 = reference_cnn(x, params, approx_gelu=True, emulate_bf16=True)
    assert jnp.allclose(out, ref_bf16, rtol=2e-3, atol=2e-3), \
        "mismatch vs bf16-emulated reference"

    # Loose sanity check vs full-f32, exact-erf GELU (PyTorch semantics).
    ref_f32 = reference_cnn(x, params, approx_gelu=False, emulate_bf16=False)
    assert jnp.allclose(out, ref_f32, rtol=5e-2, atol=5e-2), \
        "mismatch vs f32 reference"

    print("KERNEL_OK")
</pallas_src>

<mosaic_0001>
module attributes {stable_mosaic.version = 11 : i64} {
  func.func @_mlp_resident_kernel(%arg0: i32, %arg1: memref<256x128xf32, #tpu.memory_space<vmem>>, %arg2: memref<128x256xbf16, #tpu.memory_space<vmem>>, %arg3: memref<1x256xf32, #tpu.memory_space<vmem>>, %arg4: memref<256x128xbf16, #tpu.memory_space<vmem>>, %arg5: memref<1x128xf32, #tpu.memory_space<vmem>>, %arg6: memref<256x128xf32, #tpu.memory_space<vmem>>) attributes {dimension_semantics = [#tpu.dimension_semantics<parallel>], iteration_bounds = array<i64: 1>, scalar_prefetch = 0 : i64, scratch_operands = 0 : i64, tpu.core_type = #tpu.core_type<tc>, window_params = [{transform_indices = @transform_0, window_bounds = array<i64: 256, 128>}, {pipeline_mode = #tpu.pipeline_mode<synchronous>, transform_indices = @transform_1, window_bounds = array<i64: 128, 256>}, {pipeline_mode = #tpu.pipeline_mode<synchronous>, transform_indices = @transform_2, window_bounds = array<i64: 1, 256>}, {pipeline_mode = #tpu.pipeline_mode<synchronous>, transform_indices = @transform_3, window_bounds = array<i64: 256, 128>}, {pipeline_mode = #tpu.pipeline_mode<synchronous>, transform_indices = @transform_4, window_bounds = array<i64: 1, 128>}, {transform_indices = @transform_5, window_bounds = array<i64: 256, 128>}]} {
    %c0 = arith.constant 0 : index
    %c0_0 = arith.constant 0 : index
    %0 = vector.load %arg1[%c0, %c0_0] : memref<256x128xf32, #tpu.memory_space<vmem>>, vector<256x128xf32>
    %1 = arith.truncf %0 : vector<256x128xf32> to vector<256x128xbf16>
    %c0_1 = arith.constant 0 : index
    %c0_2 = arith.constant 0 : index
    %2 = vector.load %arg2[%c0_1, %c0_2] : memref<128x256xbf16, #tpu.memory_space<vmem>>, vector<128x256xbf16>
    %cst = arith.constant dense<0.000000e+00> : vector<256x256xf32>
    %3 = tpu.matmul %1, %2, %cst {dimension_numbers = #tpu.dot_dimension_numbers<[1], [0], [0], [1], [0, 0, 1, 1], [], []>} : vector<256x128xbf16>, vector<128x256xbf16>, vector<256x256xf32> -> vector<256x256xf32>
    %c0_3 = arith.constant 0 : index
    %c0_4 = arith.constant 0 : index
    %4 = vector.load %arg3[%c0_3, %c0_4] : memref<1x256xf32, #tpu.memory_space<vmem>>, vector<1x256xf32>
    %5 = vector.broadcast %4 : vector<1x256xf32> to vector<256x256xf32>
    %6 = arith.addf %3, %5 : vector<256x256xf32>
    %7 = arith.mulf %6, %6 : vector<256x256xf32>
    %8 = arith.mulf %6, %7 : vector<256x256xf32>
    %cst_5 = arith.constant 4.471500e-02 : f32
    %9 = vector.broadcast %cst_5 : f32 to vector<256x256xf32>
    %10 = arith.mulf %9, %8 : vector<256x256xf32>
    %11 = arith.addf %6, %10 : vector<256x256xf32>
    %cst_6 = arith.constant 0.797884583 : f32
    %12 = vector.broadcast %cst_6 : f32 to vector<256x256xf32>
    %13 = arith.mulf %12, %11 : vector<256x256xf32>
    %14 = math.tanh %13 : vector<256x256xf32>
    %cst_7 = arith.constant 1.000000e+00 : f32
    %15 = vector.broadcast %cst_7 : f32 to vector<256x256xf32>
    %16 = arith.addf %15, %14 : vector<256x256xf32>
    %cst_8 = arith.constant 5.000000e-01 : f32
    %17 = vector.broadcast %cst_8 : f32 to vector<256x256xf32>
    %18 = arith.mulf %17, %16 : vector<256x256xf32>
    %19 = arith.mulf %6, %18 : vector<256x256xf32>
    %20 = arith.truncf %19 : vector<256x256xf32> to vector<256x256xbf16>
    %c0_9 = arith.constant 0 : index
    %c0_10 = arith.constant 0 : index
    %21 = vector.load %arg4[%c0_9, %c0_10] : memref<256x128xbf16, #tpu.memory_space<vmem>>, vector<256x128xbf16>
    %cst_11 = arith.constant dense<0.000000e+00> : vector<256x128xf32>
    %22 = tpu.matmul %20, %21, %cst_11 {dimension_numbers = #tpu.dot_dimension_numbers<[1], [0], [0], [1], [0, 0, 1, 1], [], []>} : vector<256x256xbf16>, vector<256x128xbf16>, vector<256x128xf32> -> vector<256x128xf32>
    %c0_12 = arith.constant 0 : index
    %c0_13 = arith.constant 0 : index
    %23 = vector.load %arg5[%c0_12, %c0_13] : memref<1x128xf32, #tpu.memory_space<vmem>>, vector<1x128xf32>
    %24 = vector.broadcast %23 : vector<1x128xf32> to vector<256x128xf32>
    %25 = arith.addf %22, %24 : vector<256x128xf32>
    %c0_14 = arith.constant 0 : index
    %c0_15 = arith.constant 0 : index
    %26 = vector.load %arg6[%c0_14, %c0_15] : memref<256x128xf32, #tpu.memory_space<vmem>>, vector<256x128xf32>
    tpu.vector_store %arg6[%c0_14, %c0_15], %25 {strides = array<i32>} : memref<256x128xf32, #tpu.memory_space<vmem>>, vector<256x128xf32>,
    return
  }
  func.func @transform_0(%arg0: i32) -> (i32, i32) {
    %c0_i32 = arith.constant 0 : i32
    %c0_i32_0 = arith.constant 0 : i32
    return %arg0, %c0_i32 : i32, i32
  }
  func.func @transform_1(%arg0: i32) -> (i32, i32) {
    %c0_i32 = arith.constant 0 : i32
    %c0_i32_0 = arith.constant 0 : i32
    %c0_i32_1 = arith.constant 0 : i32
    return %c0_i32, %c0_i32_0 : i32, i32
  }
  func.func @transform_2(%arg0: i32) -> (i32, i32) {
    %c0_i32 = arith.constant 0 : i32
    %c0_i32_0 = arith.constant 0 : i32
    %c0_i32_1 = arith.constant 0 : i32
    return %c0_i32, %c0_i32_0 : i32, i32
  }
  func.func @transform_3(%arg0: i32) -> (i32, i32) {
    %c0_i32 = arith.constant 0 : i32
    %c0_i32_0 = arith.constant 0 : i32
    %c0_i32_1 = arith.constant 0 : i32
    return %c0_i32, %c0_i32_0 : i32, i32
  }
  func.func @transform_4(%arg0: i32) -> (i32, i32) {
    %c0_i32 = arith.constant 0 : i32
    %c0_i32_0 = arith.constant 0 : i32
    %c0_i32_1 = arith.constant 0 : i32
    return %c0_i32, %c0_i32_0 : i32, i32
  }
  func.func @transform_5(%arg0: i32) -> (i32, i32) {
    %c0_i32 = arith.constant 0 : i32
    %c0_i32_0 = arith.constant 0 : i32
    return %arg0, %c0_i32 : i32, i32
  }
}

</mosaic_0001>

<bundles_post_ra>
// kernel: tpu_custom_call.1
= control target key start
LH: loop header
LB: loop body
LE: loop exit
PB: predicated region body
PF: predicated region fallthrough
CT: control target
= control target key end

     0   :  { %10 = vsyncpa [#allocation3], 0  ;;  %s2700_s0 = inlined_call_operand.hbm [shape: f32[256,128], index: 0, kind: input, shape index: {}]   ;;  %s2701_s1 = inlined_call_operand.hbm [shape: bf16[128,256], index: 1, kind: input, shape index: {}]   ;;  %s2702_s2 = inlined_call_operand.vmem [shape: f32[1,256], index: 2, kind: input, shape index: {}]   ;;  %s2703_s3 = inlined_call_operand.hbm [shape: bf16[256,128], index: 3, kind: input, shape index: {}]   ;;  %s2704_s4 = inlined_call_operand.vmem [shape: f32[1,128], index: 4, kind: input, shape index: {}]   ;;  %s2705_s5 = inlined_call_operand.hbm [shape: f32[256,128], index: 5, kind: output, shape index: {}]  }
   0x1   :  { %11 = vsyncpa [#allocation6], 0 }
   0x2   :  { %12 = vsyncpa [#allocation4], 0  ;;  %s1782_s18 = smov [#allocation5]   ;;  %s1783_s20 = smov [#allocation2]  }
   0x3   :  { %s30_s19 = sshll.u32 %s1782_s18, 4  ;;  %s18_s21 = sshll.u32 %s1783_s20, 4  ;;  %s31_s19 = int_to_ptr.vmem [resolvable:$true] %s30_s19  ;;  %s1821_s21 = int_to_ptr.vmem [resolvable:$true] %s18_s21 }
   0x4   :  { %s1688_s24 = scalar_lea.hbm %s2701_s1, 2048 }
   0x5   :  { %p1689_p0 = scmp.ne.s32.totalorder %s2701_s1, %s1688_s24  ;;  %p1692_p1 = scmp.lt.u32.totalorder %s1688_s24, %s2701_s1 }
   0x7   :  { %p1694_p2 = pnand %p1692_p1, %p1689_p0 }
   0x9   :  { %1697 = shalt.err (!%p1694_p2)
}
   0xa   :  { %s1698_s29 = scalar_lea.vmem %s31_s19, 2048  ;;  %p1703_p4 = scmp.lt.s32.totalorder %s31_s19, %s31_s19 }
   0xb   :  { %p1699_p3 = scmp.ne.s32.totalorder %s31_s19, %s1698_s29  ;;  %p1704_p5 = scmp.lt.s32.totalorder %s1698_s29, %s1698_s29 }
   0xd   :  { %p1705_p6 = por %p1704_p5, %p1703_p4 }
   0xf   :  { %p1706_p7 = pnand %p1705_p6, %p1699_p3 }
  0x11   :  { %1709 = shalt.err (!%p1706_p7)
}
  0x12   :  { %s1784_s30 = smov 128   ;;  %s1785_s6 = smov 8  }
  0x13   :  { %36 = dma.hbm_to_vmem [thread:$0]  %s2701_s1, 2048, %s31_s19, [#allocation6], %s1784_s30, %s1784_s30, %s1785_s6  }
  0x14   :  { %s1710_s11 = scalar_lea.hbm %s2700_s0, 4096 }
  0x15   :  { %p1711_p8 = scmp.ne.s32.totalorder %s2700_s0, %s1710_s11  ;;  %p1714_p9 = scmp.lt.u32.totalorder %s1710_s11, %s2700_s0 }
  0x17   :  { %p1716_p10 = pnand %p1714_p9, %p1711_p8 }
  0x19   :  { %1719 = shalt.err (!%p1716_p10)
}
  0x1a   :  { %s1720_s16 = scalar_lea.vmem %s1821_s21, 4096  ;;  %p1725_p12 = scmp.lt.s32.totalorder %s1821_s21, %s1821_s21 }
  0x1b   :  { %p1721_p11 = scmp.ne.s32.totalorder %s1821_s21, %s1720_s16  ;;  %p1726_p13 = scmp.lt.s32.totalorder %s1720_s16, %s1720_s16 }
  0x1d   :  { %p1727_p0 = por %p1726_p13, %p1725_p12 }
  0x1f   :  { %p1728_p1 = pnand %p1727_p0, %p1721_p11 }
  0x21   :  { %1731 = shalt.err (!%p1728_p1)
}
  0x22   :  { %24 = dma.hbm_to_vmem [thread:$0]  %s2700_s0, 4096, %s1821_s21, [#allocation3], %s1784_s30, %s1784_s30, %s1785_s6  }
  0x23   :  { %s1786_s18 = smov [#allocation7]   ;;  %s1732_s23 = scalar_lea.hbm %s2703_s3, 2048 }
  0x24   :  { %s44_s19 = sshll.u32 %s1786_s18, 4  ;;  %p1733_p2 = scmp.ne.s32.totalorder %s2703_s3, %s1732_s23  ;;  %s45_s19 = int_to_ptr.vmem [resolvable:$true] %s44_s19 }
  0x25   :  { %p1736_p3 = scmp.lt.u32.totalorder %s1732_s23, %s2703_s3 }
  0x27   :  { %p1738_p4 = pnand %p1736_p3, %p1733_p2 }
  0x29   :  { %1741 = shalt.err (!%p1738_p4)
}
  0x2a   :  { %s1742_s28 = scalar_lea.vmem %s45_s19, 2048  ;;  %p1747_p6 = scmp.lt.s32.totalorder %s45_s19, %s45_s19 }
  0x2b   :  { %p1743_p5 = scmp.ne.s32.totalorder %s45_s19, %s1742_s28  ;;  %p1748_p7 = scmp.lt.s32.totalorder %s1742_s28, %s1742_s28 }
  0x2d   :  { %p1749_p8 = por %p1748_p7, %p1747_p6 }
  0x2f   :  { %p1750_p9 = pnand %p1749_p8, %p1743_p5 }
  0x31   :  { %1753 = shalt.err (!%p1750_p9)
}
  0x32   :  { %s1787_s0 = smov 64   ;;  %s1788_s21 = smov 4  }
  0x33   :  { %50 = dma.hbm_to_vmem [thread:$0]  %s2703_s3, 2048, %s45_s19, [#allocation6], %s1787_s0, %s1787_s0, %s1788_s21  }
  0x34   :  { %1776 = dma.done.wait [#allocation3], 4096  }
  0x35   :  { %1777 = vsyncadd [#allocation3], 4294963200 }
  0x36   :  { %1778 = dma.done.wait [#allocation6], 4096  }
  0x37   :  { %1779 = vsyncadd [#allocation6], 4294963200  ;;  %v1789_v0 = vmov 0   ;;  %v1520_v1 = vld [vmem:[#allocation5 + $0x4] ss:$8 sps:$4 sm:$0xff]   ;;  %v65_v20 = vld [vmem:[#allocation2 + $0x10] sm:$0xff] }
  0x38   :  { %251 = vmatprep.mubr.bf16.mxu0 %v1789_v0  ;;  %v1522_v2 = vld [vmem:[#allocation5] ss:$8 sps:$4 sm:$0xff]   ;;  %219 = vmatprep.subr.bf16.mxu0 %v1520_v1  ;;  %v1523_v3 = vld [vmem:[#allocation5 + $0x14] ss:$8 sps:$4 sm:$0xff]   ;;  %v1525_v4 = vld [vmem:[#allocation5 + $0x10] ss:$8 sps:$4 sm:$0xff]  }
  0x39   :  { %220 = vmatpush1.bf16.msra.mxu0 %v1522_v2  ;;  %v1526_v5 = vld [vmem:[#allocation5 + $0x24] ss:$8 sps:$4 sm:$0xff]   ;;  %v1528_v6 = vld [vmem:[#allocation5 + $0x20] ss:$8 sps:$4 sm:$0xff]   ;;  %v1529_v7 = vld [vmem:[#allocation5 + $0x34] ss:$8 sps:$4 sm:$0xff]  }
  0x3a   :  { %221 = vmatprep.subr.bf16.mxu0 %v1523_v3  ;;  %v1531_v8 = vld [vmem:[#allocation5 + $0x30] ss:$8 sps:$4 sm:$0xff]   ;;  %v1532_v9 = vld [vmem:[#allocation5 + $0x44] ss:$8 sps:$4 sm:$0xff]   ;;  %v1534_v10 = vld [vmem:[#allocation5 + $0x40] ss:$8 sps:$4 sm:$0xff]  }
  0x3b   :  { %v1535_v11 = vld [vmem:[#allocation5 + $0x54] ss:$8 sps:$4 sm:$0xff]   ;;  %v1537_v12 = vld [vmem:[#allocation5 + $0x50] ss:$8 sps:$4 sm:$0xff]   ;;  %v1538_v13 = vld [vmem:[#allocation5 + $0x64] ss:$8 sps:$4 sm:$0xff]  }
  0x3c   :  { %v1540_v14 = vld [vmem:[#allocation5 + $0x60] ss:$8 sps:$4 sm:$0xff]   ;;  %v1541_v15 = vld [vmem:[#allocation5 + $0x74] ss:$8 sps:$4 sm:$0xff]   ;;  %v1543_v16 = vld [vmem:[#allocation5 + $0x70] ss:$8 sps:$4 sm:$0xff]  }
  0x3d   :  { %222 = vmatpush1.bf16.msra.mxu0 %v1525_v4  ;;  %v63_v17 = vld [vmem:[#allocation2] sm:$0xff]  ;;  %v64_v18 = vld [vmem:[#allocation2 + $0x8] sm:$0xff]  ;;  %v66_v21 = vld [vmem:[#allocation2 + $0x18] sm:$0xff] }
  0x3e   :  { %223 = vmatprep.subr.bf16.mxu0 %v1526_v5  ;;  %v95_v19 = vpack.c.bf16 %v64_v18, %v63_v17  ;;  %v96_v22 = vpack.c.bf16 %v66_v21, %v65_v20  ;;  %v67_v23 = vld [vmem:[#allocation2 + $0x20] sm:$0xff]  ;;  %v68_v24 = vld [vmem:[#allocation2 + $0x28] sm:$0xff]  ;;  %v69_v26 = vld [vmem:[#allocation2 + $0x30] sm:$0xff]  ;;  %v129_v18 = vlaneseq }
  0x3f   :  { %v97_v25 = vpack.c.bf16 %v68_v24, %v67_v23  ;;  %v70_v27 = vld [vmem:[#allocation2 + $0x38] sm:$0xff]  ;;  %v71_v29 = vld [vmem:[#allocation2 + $0x40] sm:$0xff]  ;;  %v72_v30 = vld [vmem:[#allocation2 + $0x48] sm:$0xff] }
  0x40   :  { %v98_v28 = vpack.c.bf16 %v70_v27, %v69_v26  ;;  %v99_v31 = vpack.c.bf16 %v72_v30, %v71_v29  ;;  %v73_v32 = vld [vmem:[#allocation2 + $0x50] sm:$0xff]  ;;  %v74_v33 = vld [vmem:[#allocation2 + $0x58] sm:$0xff]  ;;  %v75_v35 = vld [vmem:[#allocation2 + $0x60] sm:$0xff] }
  0x41   :  { %224 = vmatpush1.bf16.msra.mxu0 %v1528_v6  ;;  %v100_v34 = vpack.c.bf16 %v74_v33, %v73_v32  ;;  %v76_v36 = vld [vmem:[#allocation2 + $0x68] sm:$0xff]  ;;  %v77_v38 = vld [vmem:[#allocation2 + $0x70] sm:$0xff]  ;;  %v78_v39 = vld [vmem:[#allocation2 + $0x78] sm:$0xff] }
  0x42   :  { %225 = vmatprep.subr.bf16.mxu0 %v1529_v7  ;;  %v101_v37 = vpack.c.bf16 %v76_v36, %v75_v35  ;;  %v102_v40 = vpack.c.bf16 %v78_v39, %v77_v38  ;;  %v79_v41 = vld [vmem:[#allocation2 + $0x80] sm:$0xff]  ;;  %v80_v42 = vld [vmem:[#allocation2 + $0x88] sm:$0xff]  ;;  %v81_v44 = vld [vmem:[#allocation2 + $0x90] sm:$0xff] }
  0x43   :  { %v103_v43 = vpack.c.bf16 %v80_v42, %v79_v41  ;;  %v82_v45 = vld [vmem:[#allocation2 + $0x98] sm:$0xff]  ;;  %v83_v47 = vld [vmem:[#allocation2 + $0xa0] sm:$0xff]  ;;  %v84_v48 = vld [vmem:[#allocation2 + $0xa8] sm:$0xff] }
  0x44   :  { %v104_v46 = vpack.c.bf16 %v82_v45, %v81_v44  ;;  %v105_v49 = vpack.c.bf16 %v84_v48, %v83_v47  ;;  %v85_v50 = vld [vmem:[#allocation2 + $0xb0] sm:$0xff]  ;;  %v86_v51 = vld [vmem:[#allocation2 + $0xb8] sm:$0xff]  ;;  %v1544_v53 = vld [vmem:[#allocation7 + $0x40] sm:$0xff]  }
  0x45   :  { %226 = vmatpush1.bf16.msra.mxu0 %v1531_v8  ;;  %v106_v52 = vpack.c.bf16 %v86_v51, %v85_v50  ;;  %v1545_v54 = vld [vmem:[#allocation7] sm:$0xff]   ;;  %1399 = vmatprep.subr.bf16.mxu1 %v1544_v53  ;;  %v88_v56 = vld [vmem:[#allocation2 + $0xc8] sm:$0xff]  ;;  %v1548_v60 = vld [vmem:[#allocation7 + $0x50] sm:$0xff]  }
  0x46   :  { %227 = vmatprep.subr.bf16.mxu0 %v1532_v9  ;;  %1400 = vmatpush3.bf16.msra.mxu1 %v1545_v54  ;;  %v87_v55 = vld [vmem:[#allocation2 + $0xc0] sm:$0xff]  ;;  %v1546_v57 = vld [vmem:[#allocation7 + $0x48] sm:$0xff]   ;;  %v1549_v61 = vld [vmem:[#allocation7 + $0x10] sm:$0xff]  }
  0x47   :  { %v1547_v58 = vld [vmem:[#allocation7 + $0x8] sm:$0xff]   ;;  %1401 = vmatprep.subr.bf16.mxu1 %v1546_v57  ;;  %v107_v59 = vpack.c.bf16 %v88_v56, %v87_v55  ;;  %v89_v62 = vld [vmem:[#allocation2 + $0xd0] sm:$0xff]  ;;  %v90_v63 = vld [vmem:[#allocation2 + $0xd8] sm:$0xff] }
  0x48   :  { %v1550_v1 = vld [vmem:[#allocation7 + $0x58] sm:$0xff]   ;;  %v108_v3 = vpack.c.bf16 %v90_v63, %v89_v62  ;;  %v1552_v4 = vld [vmem:[#allocation7 + $0x60] sm:$0xff]   ;;  %v92_v7 = vld [vmem:[#allocation2 + $0xe8] sm:$0xff] }
  0x49   :  { %228 = vmatpush1.bf16.msra.mxu0 %v1534_v10  ;;  %v1551_v2 = vld [vmem:[#allocation7 + $0x18] sm:$0xff]   ;;  %v1553_v5 = vld [vmem:[#allocation7 + $0x20] sm:$0xff]   ;;  %v1554_v8 = vld [vmem:[#allocation7 + $0x68] sm:$0xff]  }
  0x4a   :  { %229 = vmatprep.subr.bf16.mxu0 %v1535_v11  ;;  %1402 = vmatpush3.bf16.msra.mxu1 %v1547_v58  ;;  %v91_v6 = vld [vmem:[#allocation2 + $0xe0] sm:$0xff]  ;;  %v1555_v9 = vld [vmem:[#allocation7 + $0x28] sm:$0xff]   ;;  %v1556_v11 = vld [vmem:[#allocation7 + $0x70] sm:$0xff]  }
  0x4b   :  { %1403 = vmatprep.subr.bf16.mxu1 %v1548_v60  ;;  %v109_v10 = vpack.c.bf16 %v92_v7, %v91_v6  ;;  %v127_v21 = vld [vmem:[%s2702_s2] sm:$0x3] }
  0x4d   :  { %230 = vmatpush1.bf16.msra.mxu0 %v1537_v12  ;;  %v1557_v12 = vld [vmem:[#allocation7 + $0x30] sm:$0xff]  }
  0x4e   :  { %231 = vmatprep.subr.bf16.mxu0 %v1538_v13  ;;  %1404 = vmatpush3.bf16.msra.mxu1 %v1549_v61  ;;  %v93_v13 = vld [vmem:[#allocation2 + $0xf0] sm:$0xff] }
  0x4f   :  { %1405 = vmatprep.subr.bf16.mxu1 %v1550_v1 }
  0x51   :  { %232 = vmatpush1.bf16.msra.mxu0 %v1540_v14  ;;  %v94_v14 = vld [vmem:[#allocation2 + $0xf8] sm:$0xff] }
  0x52   :  { %233 = vmatprep.subr.bf16.mxu0 %v1541_v15  ;;  %1406 = vmatpush3.bf16.msra.mxu1 %v1551_v2  ;;  %v1558_v15 = vld [vmem:[#allocation7 + $0x78] sm:$0xff]   ;;  %v110_v17 = vpack.c.bf16 %v94_v14, %v93_v13 }
  0x53   :  { %1407 = vmatprep.subr.bf16.mxu1 %v1552_v4 }
  0x55   :  { %234 = vmatpush1.bf16.msra.mxu0 %v1543_v16  ;;  %v1559_v16 = vld [vmem:[#allocation7 + $0x38] sm:$0xff]  }
  0x56   :  { %1408 = vmatpush3.bf16.msra.mxu1 %v1553_v5 }
  0x57   :  { %1409 = vmatprep.subr.bf16.mxu1 %v1554_v8 }
  0x58   :  { %252 = vmatmul.mubr.bf16.vlgmr.msra.gmra.mrb[0].mxu0 %v95_v19  ;;  %v130_v19 = vshrl.u32 %v129_v18, 7 }
  0x59   :  { %261 = vmatprep.mubr.bf16.mxu0 %v1789_v0 }
  0x5a   :  { %1410 = vmatpush3.bf16.msra.mxu1 %v1555_v9  ;;  %v131_v20 = vsub.s32 0, %v130_v19 }
  0x5b   :  { %1411 = vmatprep.subr.bf16.mxu1 %v1556_v11 }
  0x5c   :  { %v1889_v23 = vrot.slane %v127_v21, %v131_v20 }
  0x5e   :  { %1412 = vmatpush3.bf16.msra.mxu1 %v1557_v12 }
  0x5f   :  { %1413 = vmatprep.subr.bf16.mxu1 %v1558_v15 }
  0x60   :  { %262 = vmatmul.mubr.bf16.gmra.mrb[4].mxu0 %v96_v22  ;;  %v135_v22 = vsub.s32 1, %v130_v19 }
  0x61   :  { %271 = vmatprep.mubr.bf16.mxu0 %v1789_v0 }
  0x62   :  { %1414 = vmatpush3.bf16.msra.mxu1 %v1559_v16  ;;  %v1891_v24 = vrot.slane %v127_v21, %v135_v22 }
  0x68   :  { %272 = vmatmul.mubr.bf16.gmra.mrb[8].mxu0 %v97_v25 }
  0x69   :  { %281 = vmatprep.mubr.bf16.mxu0 %v1789_v0 }
  0x70   :  { %282 = vmatmul.mubr.bf16.gmra.mrb[12].mxu0 %v98_v28 }
  0x71   :  { %291 = vmatprep.mubr.bf16.mxu0 %v1789_v0 }
  0x78   :  { %292 = vmatmul.mubr.bf16.gmra.mrb[16].mxu0 %v99_v31 }
  0x79   :  { %301 = vmatprep.mubr.bf16.mxu0 %v1789_v0 }
  0x80   :  { %302 = vmatmul.mubr.bf16.gmra.mrb[20].mxu0 %v100_v34 }
  0x81   :  { %311 = vmatprep.mubr.bf16.mxu0 %v1789_v0 }
  0x88   :  { %312 = vmatmul.mubr.bf16.gmra.mrb[24].mxu0 %v101_v37 }
  0x89   :  { %321 = vmatprep.mubr.bf16.mxu0 %v1789_v0 }
  0x90   :  { %322 = vmatmul.mubr.bf16.gmra.mrb[28].mxu0 %v102_v40 }
  0x91   :  { %331 = vmatprep.mubr.bf16.mxu0 %v1789_v0 }
  0x98   :  { %332 = vmatmul.mubr.bf16.gmra.mrb[32].mxu0 %v103_v43 }
  0x99   :  { %341 = vmatprep.mubr.bf16.mxu0 %v1789_v0 }
  0xa0   :  { %342 = vmatmul.mubr.bf16.gmra.mrb[36].mxu0 %v104_v46 }
  0xa1   :  { %351 = vmatprep.mubr.bf16.mxu0 %v1789_v0 }
  0xa8   :  { %352 = vmatmul.mubr.bf16.gmra.mrb[40].mxu0 %v105_v49 }
  0xa9   :  { %361 = vmatprep.mubr.bf16.mxu0 %v1789_v0 }
  0xb0   :  { %362 = vmatmul.mubr.bf16.gmra.mrb[44].mxu0 %v106_v52 }
  0xb1   :  { %371 = vmatprep.mubr.bf16.mxu0 %v1789_v0 }
  0xb8   :  { %372 = vmatmul.mubr.bf16.gmra.mrb[48].mxu0 %v107_v59 }
  0xb9   :  { %381 = vmatprep.mubr.bf16.mxu0 %v1789_v0 }
  0xc0   :  { %382 = vmatmul.mubr.bf16.gmra.mrb[52].mxu0 %v108_v3 }
  0xc1   :  { %391 = vmatprep.mubr.bf16.mxu0 %v1789_v0 }
  0xc8   :  { %392 = vmatmul.mubr.bf16.gmra.mrb[56].mxu0 %v109_v10 }
  0xc9   :  { %401 = vmatprep.mubr.bf16.mxu0 %v1789_v0 }
  0xd0   :  { %402 = vmatmul.mubr.bf16.gmra.mrb[60].mxu0 %v110_v17 }
 0x12b   :  { %v253_v0 = vpop.f32.mrb[0].mxu0 }
 0x12c   :  { %v1894_v25 = vadd.f32 %v253_v0, %v1889_v23  ;;  %v255_v26 = vpop.f32.mrb[1].mxu0 }
 0x12d   :  { %v1897_v27 = vadd.f32 %v255_v26, %v1891_v24  ;;  %v257_v28 = vpop.f32.mrb[2].mxu0 }
 0x12e   :  { %v412_v29 = vmul.f32 %v1894_v25, %v1894_v25  ;;  %v1902_v30 = vadd.f32 %v257_v28, %v1889_v23  ;;  %v259_v31 = vpop.f32.mrb[3].mxu0 }
 0x12f   :  { %v413_v32 = vmul.f32 %v1897_v27, %v1897_v27  ;;  %v1907_v33 = vadd.f32 %v259_v31, %v1891_v24 }
 0x130   :  { %v476_v34 = vmul.f32 %v412_v29, %v1894_v25  ;;  %v414_v35 = vmul.f32 %v1902_v30, %v1902_v30 }
 0x131   :  { %v477_v36 = vmul.f32 %v413_v32, %v1897_v27  ;;  %v415_v37 = vmul.f32 %v1907_v33, %v1907_v33 }
 0x132   :  { %v540_v38 = vmul.f32 0.044715, %v476_v34  ;;  %v478_v39 = vmul.f32 %v414_v35, %v1902_v30 }
 0x133   :  { %v541_v40 = vmul.f32 0.044715, %v477_v36  ;;  %v479_v41 = vmul.f32 %v415_v37, %v1907_v33  ;;  %v263_v42 = vpop.f32.mrb[4].mxu0 }
 0x134   :  { %v604_v43 = vadd.f32 %v540_v38, %v1894_v25  ;;  %v542_v44 = vmul.f32 0.044715, %v478_v39  ;;  %v1919_v45 = vadd.f32 %v263_v42, %v1889_v23  ;;  %v265_v46 = vpop.f32.mrb[5].mxu0 }
 0x135   :  { %v543_v47 = vmul.f32 0.044715, %v479_v41  ;;  %v1922_v48 = vadd.f32 %v265_v46, %v1891_v24  ;;  %v267_v49 = vpop.f32.mrb[6].mxu0  ;;  %v605_v50 = vadd.f32 %v541_v40, %v1897_v27 }
 0x136   :  { %v668_v51 = vmul.f32 0.7978846, %v604_v43  ;;  %v606_v52 = vadd.f32 %v542_v44, %v1902_v30  ;;  %v416_v53 = vmul.f32 %v1919_v45, %v1919_v45  ;;  %v1929_v54 = vadd.f32 %v267_v49, %v1889_v23  ;;  %v269_v55 = vpop.f32.mrb[7].mxu0 }
 0x137   :  { %v417_v56 = vmul.f32 %v1922_v48, %v1922_v48  ;;  %v1934_v57 = vadd.f32 %v269_v55, %v1891_v24  ;;  %v607_v58 = vadd.f32 %v543_v47, %v1907_v33  ;;  %v669_v59 = vmul.f32 0.7978846, %v605_v50 }
 0x138   :  { %1560 = vtanh.f32 %v668_v51  ;;  %v670_v60 = vmul.f32 0.7978846, %v606_v52  ;;  %v480_v61 = vmul.f32 %v416_v53, %v1919_v45  ;;  %v418_v62 = vmul.f32 %v1929_v54, %v1929_v54 }
 0x139   :  { %v481_v63 = vmul.f32 %v417_v56, %v1922_v48  ;;  %v419_v1 = vmul.f32 %v1934_v57, %v1934_v57  ;;  %v671_v2 = vmul.f32 0.7978846, %v607_v58  ;;  %1562 = vtanh.f32 %v669_v59 }
 0x13a   :  { %1564 = vtanh.f32 %v670_v60  ;;  %v544_v3 = vmul.f32 0.044715, %v480_v61  ;;  %v482_v4 = vmul.f32 %v418_v62, %v1929_v54 }
 0x13b   :  { %v545_v5 = vmul.f32 0.044715, %v481_v63  ;;  %v483_v6 = vmul.f32 %v419_v1, %v1934_v57  ;;  %v273_v7 = vpop.f32.mrb[8].mxu0  ;;  %1566 = vtanh.f32 %v671_v2 }
 0x13c   :  { %v608_v8 = vadd.f32 %v544_v3, %v1919_v45  ;;  %v546_v9 = vmul.f32 0.044715, %v482_v4  ;;  %v1947_v10 = vadd.f32 %v273_v7, %v1889_v23  ;;  %v275_v11 = vpop.f32.mrb[9].mxu0 }
 0x13d   :  { %v609_v12 = vadd.f32 %v545_v5, %v1922_v48  ;;  %v547_v13 = vmul.f32 0.044715, %v483_v6  ;;  %v1951_v14 = vadd.f32 %v275_v11, %v1891_v24  ;;  %v277_v15 = vpop.f32.mrb[10].mxu0 }
 0x13e   :  { %v672_v16 = vmul.f32 0.7978846, %v608_v8  ;;  %v610_v17 = vadd.f32 %v546_v9, %v1929_v54  ;;  %v420_v18 = vmul.f32 %v1947_v10, %v1947_v10  ;;  %v1957_v19 = vadd.f32 %v277_v15, %v1889_v23  ;;  %v279_v20 = vpop.f32.mrb[11].mxu0 }
 0x13f   :  { %v673_v21 = vmul.f32 0.7978846, %v609_v12  ;;  %v611_v22 = vadd.f32 %v547_v13, %v1934_v57  ;;  %v421_v0 = vmul.f32 %v1951_v14, %v1951_v14  ;;  %v1963_v26 = vadd.f32 %v279_v20, %v1891_v24 }
 0x140   :  { %1568 = vtanh.f32 %v672_v16  ;;  %v674_v28 = vmul.f32 0.7978846, %v610_v17  ;;  %v484_v29 = vmul.f32 %v420_v18, %v1947_v10  ;;  %v422_v31 = vmul.f32 %v1957_v19, %v1957_v19 }
 0x141   :  { %1570 = vtanh.f32 %v673_v21  ;;  %v675_v32 = vmul.f32 0.7978846, %v611_v22  ;;  %v485_v34 = vmul.f32 %v421_v0, %v1951_v14  ;;  %v423_v35 = vmul.f32 %v1963_v26, %v1963_v26 }
 0x142   :  { %v1561_v36 = vpop.eup %1560  ;;  %1572 = vtanh.f32 %v674_v28  ;;  %v548_v37 = vmul.f32 0.044715, %v484_v29  ;;  %v486_v38 = vmul.f32 %v422_v31, %v1957_v19 }
 0x143   :  { %v1563_v39 = vpop.eup %1562  ;;  %1574 = vtanh.f32 %v675_v32  ;;  %v549_v40 = vmul.f32 0.044715, %v485_v34  ;;  %v487_v41 = vmul.f32 %v423_v35, %v1963_v26  ;;  %v283_v42 = vpop.f32.mrb[12].mxu0  ;;  %v1973_v43 = vadd.f32 1.0, %v1561_v36 }
 0x144   :  { %v1565_v44 = vpop.eup %1564  ;;  %v612_v46 = vadd.f32 %v548_v37, %v1947_v10  ;;  %v550_v47 = vmul.f32 0.044715, %v486_v38  ;;  %v1977_v49 = vadd.f32 %v283_v42, %v1889_v23  ;;  %v285_v50 = vpop.f32.mrb[13].mxu0  ;;  %v797_v51 = vadd.f32 1.0, %v1563_v39 }
 0x145   :  { %v613_v52 = vadd.f32 %v549_v40, %v1951_v14  ;;  %v551_v53 = vmul.f32 0.044715, %v487_v41  ;;  %v1981_v55 = vadd.f32 %v285_v50, %v1891_v24  ;;  %v287_v56 = vpop.f32.mrb[14].mxu0  ;;  %v1983_v58 = vadd.f32 1.0, %v1565_v44  ;;  %v1567_v1 = vpop.eup %1566 }
 0x146   :  { %v676_v59 = vmul.f32 0.7978846, %v612_v46  ;;  %v614_v60 = vadd.f32 %v550_v47, %v1957_v19  ;;  %v424_v61 = vmul.f32 %v1977_v49, %v1977_v49  ;;  %v1989_v62 = vadd.f32 %v287_v56, %v1889_v23  ;;  %v289_v63 = vpop.f32.mrb[15].mxu0 }
 0x147   :  { %v677_v2 = vmul.f32 0.7978846, %v613_v52  ;;  %v615_v3 = vadd.f32 %v551_v53, %v1963_v26  ;;  %v425_v4 = vmul.f32 %v1981_v55, %v1981_v55  ;;  %v1995_v5 = vadd.f32 %v289_v63, %v1891_v24 }
 0x148   :  { %1576 = vtanh.f32 %v676_v59  ;;  %v678_v6 = vmul.f32 0.7978846, %v614_v60  ;;  %v488_v7 = vmul.f32 %v424_v61, %v1977_v49  ;;  %v426_v8 = vmul.f32 %v1989_v62, %v1989_v62 }
 0x149   :  { %1578 = vtanh.f32 %v677_v2  ;;  %v679_v9 = vmul.f32 0.7978846, %v615_v3  ;;  %v489_v11 = vmul.f32 %v425_v4, %v1981_v55  ;;  %v427_v12 = vmul.f32 %v1995_v5, %v1995_v5 }
 0x14a   :  { %v2003_v13 = vpop.eup %1568  ;;  %1580 = vtanh.f32 %v678_v6  ;;  %v552_v15 = vmul.f32 0.044715, %v488_v7  ;;  %v490_v16 = vmul.f32 %v426_v8, %v1989_v62  ;;  %v799_v17 = vadd.f32 1.0, %v1567_v1 }
 0x14b   :  { %v2006_v18 = vpop.eup %1570  ;;  %1582 = vtanh.f32 %v679_v9  ;;  %v553_v20 = vmul.f32 0.044715, %v489_v11  ;;  %v491_v21 = vmul.f32 %v427_v12, %v1995_v5  ;;  %v293_v22 = vpop.f32.mrb[16].mxu0  ;;  %v861_v0 = vmul.f32 0.5, %v797_v51 }
 0x14c   :  { %v2009_v28 = vpop.eup %1572  ;;  %v616_v29 = vadd.f32 %v552_v15, %v1977_v49  ;;  %v554_v31 = vmul.f32 0.044715, %v490_v16  ;;  %v2013_v32 = vadd.f32 %v293_v22, %v1889_v23  ;;  %v295_v34 = vpop.f32.mrb[17].mxu0  ;;  %v863_v35 = vmul.f32 0.5, %v799_v17 }
 0x14d   :  { %v2015_v36 = vpop.eup %1574  ;;  %v617_v37 = vadd.f32 %v553_v20, %v1981_v55  ;;  %v555_v38 = vmul.f32 0.044715, %v491_v21  ;;  %v2019_v39 = vadd.f32 %v295_v34, %v1891_v24  ;;  %v297_v40 = vpop.f32.mrb[18].mxu0  ;;  %v925_v41 = vmul.f32 %v861_v0, %v1897_v27 }
 0x14e   :  { %v680_v42 = vmul.f32 0.7978846, %v616_v29  ;;  %v618_v44 = vadd.f32 %v554_v31, %v1989_v62  ;;  %v428_v46 = vmul.f32 %v2013_v32, %v2013_v32  ;;  %v2026_v47 = vadd.f32 %v297_v40, %v1889_v23  ;;  %v299_v50 = vpop.f32.mrb[19].mxu0 }
 0x14f   :  { %v681_v51 = vmul.f32 0.7978846, %v617_v37  ;;  %v619_v52 = vadd.f32 %v555_v38, %v1995_v5  ;;  %v429_v53 = vmul.f32 %v2019_v39, %v2019_v39  ;;  %v2032_v56 = vadd.f32 %v299_v50, %v1891_v24 }
 0x150   :  { %1584 = vtanh.f32 %v680_v42  ;;  %v682_v27 = vmul.f32 0.7978846, %v618_v44  ;;  %v492_v59 = vmul.f32 %v428_v46, %v2013_v32  ;;  %v430_v60 = vmul.f32 %v2026_v47, %v2026_v47 }
 0x151   :  { %1586 = vtanh.f32 %v681_v51  ;;  %v683_v61 = vmul.f32 0.7978846, %v619_v52  ;;  %v493_v63 = vmul.f32 %v429_v53, %v2019_v39  ;;  %v431_v1 = vmul.f32 %v2032_v56, %v2032_v56 }
 0x152   :  { %v2040_v2 = vpop.eup %1576  ;;  %1588 = vtanh.f32 %v682_v27  ;;  %v556_v3 = vmul.f32 0.044715, %v492_v59  ;;  %v494_v4 = vmul.f32 %v430_v60, %v2026_v47  ;;  %v927_v6 = vmul.f32 %v863_v35, %v1907_v33 }
 0x153   :  { %v2044_v7 = vpop.eup %1578  ;;  %1590 = vtanh.f32 %v683_v61  ;;  %v557_v8 = vmul.f32 0.044715, %v493_v63  ;;  %v495_v9 = vmul.f32 %v431_v1, %v2032_v56  ;;  %v860_v11 = vmul.f32 0.5, %v1973_v43  ;;  %v303_v12 = vpop.f32.mrb[20].mxu0 }
 0x154   :  { %v2048_v15 = vpop.eup %1580  ;;  %v620_v16 = vadd.f32 %v556_v3, %v2013_v32  ;;  %v558_v17 = vmul.f32 0.044715, %v494_v4  ;;  %v989_v20 = vpack.c.bf16 %v927_v6, %v925_v41  ;;  %v862_v21 = vmul.f32 0.5, %v1983_v58  ;;  %v305_v22 = vpop.f32.mrb[21].mxu0 }
 0x155   :  { %v2052_v0 = vpop.eup %1582  ;;  %v621_v33 = vadd.f32 %v557_v8, %v2019_v39  ;;  %v559_v29 = vmul.f32 0.044715, %v495_v9  ;;  %v924_v31 = vmul.f32 %v860_v11, %v1894_v25  ;;  %v2057_v34 = vadd.f32 %v303_v12, %v1889_v23  ;;  %v307_v43 = vpop.f32.mrb[22].mxu0 }
 0x156   :  { %v684_v35 = vmul.f32 0.7978846, %v620_v16  ;;  %v622_v37 = vadd.f32 %v558_v17, %v2026_v47  ;;  %1187 = vmatprep.mubr.bf16.mxu1 %v989_v20  ;;  %v926_v38 = vmul.f32 %v862_v21, %v1902_v30  ;;  %v2062_v58 = vadd.f32 %v305_v22, %v1891_v24  ;;  %v309_v40 = vpop.f32.mrb[23].mxu0 }
 0x157   :  { %v685_v41 = vmul.f32 0.7978846, %v621_v33  ;;  %v623_v42 = vadd.f32 %v559_v29, %v2032_v56  ;;  %v432_v25 = vmul.f32 %v2057_v34, %v2057_v34  ;;  %v2068_v44 = vadd.f32 %v307_v43, %v1889_v23 }
 0x158   :  { %1592 = vtanh.f32 %v684_v35  ;;  %v686_v46 = vmul.f32 0.7978846, %v622_v37  ;;  %v988_v50 = vpack.c.bf16 %v926_v38, %v924_v31  ;;  %v433_v51 = vmul.f32 %v2062_v58, %v2062_v58 }
 0x159   :  { %1594 = vtanh.f32 %v685_v41  ;;  %v687_v30 = vmul.f32 0.7978846, %v623_v42  ;;  %v496_v52 = vmul.f32 %v432_v25, %v2057_v34  ;;  %v434_v53 = vmul.f32 %v2068_v44, %v2068_v44 }
 0x15a   :  { %v2075_v27 = vpop.eup %1584  ;;  %1596 = vtanh.f32 %v686_v46  ;;  %1188 = vmatmul.mubr.bf16.vlgmr.msra.gmra.mrb[0].mxu1 %v988_v50  ;;  %v497_v59 = vmul.f32 %v433_v51, %v2062_v58  ;;  %v2079_v60 = vadd.f32 %v309_v40, %v1891_v24  ;;  %v801_v61 = vadd.f32 1.0, %v2006_v18 }
 0x15b   :  { %v2082_v63 = vpop.eup %1586  ;;  %1598 = vtanh.f32 %v687_v30  ;;  %v560_v1 = vmul.f32 0.044715, %v496_v52  ;;  %v498_v3 = vmul.f32 %v434_v53, %v2068_v44  ;;  %v803_v4 = vadd.f32 1.0, %v2015_v36  ;;  %v313_v6 = vpop.f32.mrb[24].mxu0 }
 0x15c   :  { %v2086_v8 = vpop.eup %1588  ;;  %v561_v9 = vmul.f32 0.044715, %v497_v59  ;;  %v435_v11 = vmul.f32 %v2079_v60, %v2079_v60  ;;  %v865_v12 = vmul.f32 0.5, %v801_v61  ;;  %v800_v16 = vadd.f32 1.0, %v2003_v13  ;;  %v315_v17 = vpop.f32.mrb[25].mxu0 }
 0x15d   :  { %v2091_v18 = vpop.eup %1590  ;;  %v624_v20 = vadd.f32 %v560_v1, %v2057_v34  ;;  %v562_v21 = vmul.f32 0.044715, %v498_v3  ;;  %v867_v22 = vmul.f32 0.5, %v803_v4  ;;  %v802_v33 = vadd.f32 1.0, %v2009_v28  ;;  %v317_v36 = vpop.f32.mrb[26].mxu0 }
 0x15e   :  { %v625_v29 = vadd.f32 %v561_v9, %v2062_v58  ;;  %v499_v31 = vmul.f32 %v435_v11, %v2079_v60  ;;  %v929_v43 = vmul.f32 %v865_v12, %v1922_v48  ;;  %v864_v35 = vmul.f32 0.5, %v800_v16  ;;  %v319_v37 = vpop.f32.mrb[27].mxu0 }
 0x15f   :  { %v688_v38 = vmul.f32 0.7978846, %v624_v20  ;;  %v626_v13 = vadd.f32 %v562_v21, %v2068_v44  ;;  %v931_v40 = vmul.f32 %v867_v22, %v1934_v57  ;;  %v866_v41 = vmul.f32 0.5, %v802_v33 }
 0x160   :  { %v689_v42 = vmul.f32 0.7978846, %v625_v29  ;;  %v563_v25 = vmul.f32 0.044715, %v499_v31  ;;  %v928_v46 = vmul.f32 %v864_v35, %v1919_v45  ;;  %v2102_v28 = vadd.f32 %v313_v6, %v1889_v23 }
 0x161   :  { %1600 = vtanh.f32 %v688_v38  ;;  %v690_v50 = vmul.f32 0.7978846, %v626_v13  ;;  %v991_v51 = vpack.c.bf16 %v931_v40, %v929_v43  ;;  %v930_v48 = vmul.f32 %v866_v41, %v1929_v54 }
 0x162   :  { %v2105_v30 = vpop.eup %1592  ;;  %1602 = vtanh.f32 %v689_v42  ;;  %v627_v52 = vadd.f32 %v563_v25, %v2079_v60  ;;  %v436_v57 = vmul.f32 %v2102_v28, %v2102_v28  ;;  %v2111_v53 = vadd.f32 %v315_v17, %v1891_v24 }
 0x163   :  { %v2113_v45 = vpop.eup %1594  ;;  %1604 = vtanh.f32 %v690_v50  ;;  %1195 = vmatprep.mubr.bf16.mxu1 %v991_v51  ;;  %v990_v59 = vpack.c.bf16 %v930_v48, %v928_v46  ;;  %v2116_v61 = vadd.f32 %v317_v36, %v1889_v23  ;;  %v2119_v54 = vadd.f32 %v319_v37, %v1891_v24  ;;  %v323_v1 = vpop.f32.mrb[28].mxu0 }
 0x164   :  { %v2121_v3 = vpop.eup %1596  ;;  %v691_v4 = vmul.f32 0.7978846, %v627_v52  ;;  %v500_v6 = vmul.f32 %v436_v57, %v2102_v28  ;;  %v437_v9 = vmul.f32 %v2111_v53, %v2111_v53  ;;  %v805_v11 = vadd.f32 1.0, %v2044_v7  ;;  %v325_v12 = vpop.f32.mrb[29].mxu0 }
 0x165   :  { %v2127_v16 = vpop.eup %1598  ;;  %1196 = vmatmul.mubr.bf16.gmra.mrb[4].mxu1 %v990_v59  ;;  %v438_v17 = vmul.f32 %v2116_v61, %v2116_v61  ;;  %v439_v20 = vmul.f32 %v2119_v54, %v2119_v54  ;;  %v807_v21 = vadd.f32 1.0, %v2052_v0  ;;  %v804_v22 = vadd.f32 1.0, %v2040_v2  ;;  %v327_v33 = vpop.f32.mrb[30].mxu0 }
 0x166   :  { %1606 = vtanh.f32 %v691_v4  ;;  %v564_v36 = vmul.f32 0.044715, %v500_v6  ;;  %v501_v29 = vmul.f32 %v437_v9, %v2111_v53  ;;  %v869_v7 = vmul.f32 0.5, %v805_v11  ;;  %v329_v31 = vpop.f32.mrb[31].mxu0 }
 0x167   :  { %v502_v43 = vmul.f32 %v438_v17, %v2116_v61  ;;  %v503_v35 = vmul.f32 %v439_v20, %v2119_v54  ;;  %v871_v37 = vmul.f32 0.5, %v807_v21  ;;  %v806_v38 = vadd.f32 1.0, %v2048_v15 }
 0x168   :  { %v628_v13 = vadd.f32 %v564_v36, %v2102_v28  ;;  %v565_v40 = vmul.f32 0.044715, %v501_v29  ;;  %v933_v0 = vmul.f32 %v869_v7, %v1951_v14  ;;  %v868_v2 = vmul.f32 0.5, %v804_v22 }
 0x169   :  { %v566_v41 = vmul.f32 0.044715, %v502_v43  ;;  %v567_v42 = vmul.f32 0.044715, %v503_v35  ;;  %v935_v25 = vmul.f32 %v871_v37, %v1963_v26  ;;  %v870_v46 = vmul.f32 0.5, %v806_v38 }
 0x16a   :  { %v692_v50 = vmul.f32 0.7978846, %v628_v13  ;;  %v629_v51 = vadd.f32 %v565_v40, %v2111_v53  ;;  %v932_v48 = vmul.f32 %v868_v2, %v1947_v10  ;;  %v2145_v52 = vadd.f32 %v323_v1, %v1889_v23 }
 0x16b   :  { %v2147_v15 = vpop.eup %1600  ;;  %v630_v57 = vadd.f32 %v566_v41, %v2116_v61  ;;  %v631_v14 = vadd.f32 %v567_v42, %v2119_v54  ;;  %v993_v59 = vpack.c.bf16 %v935_v25, %v933_v0  ;;  %v934_v4 = vmul.f32 %v870_v46, %v1957_v19  ;;  %v333_v6 = vpop.f32.mrb[32].mxu0 }
 0x16c   :  { %v2152_v26 = vpop.eup %1602  ;;  %1608 = vtanh.f32 %v692_v50  ;;  %v693_v9 = vmul.f32 0.7978846, %v629_v51  ;;  %v440_v10 = vmul.f32 %v2145_v52, %v2145_v52  ;;  %v2157_v1 = vadd.f32 %v325_v12, %v1891_v24  ;;  %v335_v11 = vpop.f32.mrb[33].mxu0 }
 0x16d   :  { %v2159_v17 = vpop.eup %1604  ;;  %v694_v20 = vmul.f32 0.7978846, %v630_v57  ;;  %v695_v21 = vmul.f32 0.7978846, %v631_v14  ;;  %1203 = vmatprep.mubr.bf16.mxu1 %v993_v59  ;;  %v992_v22 = vpack.c.bf16 %v934_v4, %v932_v48  ;;  %v2162_v19 = vadd.f32 %v327_v33, %v1889_v23  ;;  %v337_v36 = vpop.f32.mrb[34].mxu0 }
 0x16e   :  { %1610 = vtanh.f32 %v693_v9  ;;  %v504_v29 = vmul.f32 %v440_v10, %v2145_v52  ;;  %v441_v7 = vmul.f32 %v2157_v1, %v2157_v1  ;;  %v2168_v12 = vadd.f32 %v329_v31, %v1891_v24  ;;  %v339_v43 = vpop.f32.mrb[35].mxu0 }
 0x16f   :  { %1612 = vtanh.f32 %v694_v20  ;;  %1204 = vmatmul.mubr.bf16.gmra.mrb[8].mxu1 %v992_v22  ;;  %v442_v35 = vmul.f32 %v2162_v19, %v2162_v19  ;;  %v809_v37 = vadd.f32 1.0, %v2082_v63  ;;  %v811_v33 = vadd.f32 1.0, %v2091_v18 }
 0x170   :  { %v2174_v38 = vpop.eup %1606  ;;  %1614 = vtanh.f32 %v695_v21  ;;  %v568_v13 = vmul.f32 0.044715, %v504_v29  ;;  %v505_v40 = vmul.f32 %v441_v7, %v2157_v1  ;;  %v443_v31 = vmul.f32 %v2168_v12, %v2168_v12 }
 0x171   :  { %v506_v0 = vmul.f32 %v442_v35, %v2162_v19  ;;  %v873_v2 = vmul.f32 0.5, %v809_v37  ;;  %v875_v41 = vmul.f32 0.5, %v811_v33  ;;  %v808_v42 = vadd.f32 1.0, %v2075_v27 }
 0x172   :  { %v632_v25 = vadd.f32 %v568_v13, %v2145_v52  ;;  %v569_v63 = vmul.f32 0.044715, %v505_v40  ;;  %v507_v18 = vmul.f32 %v443_v31, %v2168_v12  ;;  %v810_v46 = vadd.f32 1.0, %v2086_v8 }
 0x173   :  { %v570_v50 = vmul.f32 0.044715, %v506_v0  ;;  %v937_v51 = vmul.f32 %v873_v2, %v1981_v55  ;;  %v939_v48 = vmul.f32 %v875_v41, %v1995_v5  ;;  %v872_v57 = vmul.f32 0.5, %v808_v42  ;;  %v2186_v14 = vpop.f32.mrb[36].mxu0 }
 0x174   :  { %v696_v59 = vmul.f32 0.7978846, %v632_v25  ;;  %v633_v4 = vadd.f32 %v569_v63, %v2157_v1  ;;  %v571_v9 = vmul.f32 0.044715, %v507_v18  ;;  %v874_v27 = vmul.f32 0.5, %v810_v46  ;;  %v2189_v10 = vpop.f32.mrb[37].mxu0 }
 0x175   :  { %v634_v20 = vadd.f32 %v570_v50, %v2162_v19  ;;  %v995_v21 = vpack.c.bf16 %v939_v48, %v937_v51  ;;  %v936_v8 = vmul.f32 %v872_v57, %v1977_v49  ;;  %v2194_v22 = vadd.f32 %v333_v6, %v1889_v23  ;;  %v2196_v55 = vpop.f32.mrb[38].mxu0 }
 0x176   :  { %v2198_v5 = vpop.eup %1608  ;;  %1616 = vtanh.f32 %v696_v59  ;;  %v697_v29 = vmul.f32 0.7978846, %v633_v4  ;;  %v635_v7 = vadd.f32 %v571_v9, %v2168_v12  ;;  %v938_v35 = vmul.f32 %v874_v27, %v1989_v62  ;;  %v2202_v37 = vpop.f32.mrb[39].mxu0 }
 0x177   :  { %v698_v33 = vmul.f32 0.7978846, %v634_v20  ;;  %1211 = vmatprep.mubr.bf16.mxu1 %v995_v21  ;;  %v444_v49 = vmul.f32 %v2194_v22, %v2194_v22  ;;  %v2207_v6 = vadd.f32 %v335_v11, %v1891_v24  ;;  %v2210_v13 = vadd.f32 %v337_v36, %v1889_v23 }
 0x178   :  { %v2212_v40 = vpop.eup %1610  ;;  %1618 = vtanh.f32 %v697_v29  ;;  %v699_v31 = vmul.f32 0.7978846, %v635_v7  ;;  %v994_v0 = vpack.c.bf16 %v938_v35, %v936_v8  ;;  %v2215_v62 = vadd.f32 %v339_v43, %v1891_v24 }
 0x179   :  { %v2217_v2 = vpop.eup %1612  ;;  %1620 = vtanh.f32 %v698_v33  ;;  %v508_v41 = vmul.f32 %v444_v49, %v2194_v22  ;;  %v445_v11 = vmul.f32 %v2207_v6, %v2207_v6  ;;  %v446_v36 = vmul.f32 %v2210_v13, %v2210_v13 }
 0x17a   :  { %v2224_v42 = vpop.eup %1614  ;;  %1622 = vtanh.f32 %v699_v31  ;;  %1212 = vmatmul.mubr.bf16.gmra.mrb[12].mxu1 %v994_v0  ;;  %v447_v25 = vmul.f32 %v2215_v62, %v2215_v62  ;;  %v813_v43 = vadd.f32 1.0, %v2113_v45  ;;  %v815_v63 = vadd.f32 1.0, %v2127_v16 }
 0x17b   :  { %v572_v18 = vmul.f32 0.044715, %v508_v41  ;;  %v509_v46 = vmul.f32 %v445_v11, %v2207_v6  ;;  %v510_v50 = vmul.f32 %v446_v36, %v2210_v13  ;;  %v812_v51 = vadd.f32 1.0, %v2105_v30  ;;  %v2233_v48 = vpop.f32.mrb[40].mxu0 }
 0x17c   :  { %v511_v57 = vmul.f32 %v447_v25, %v2215_v62  ;;  %v877_v59 = vmul.f32 0.5, %v813_v43  ;;  %v879_v4 = vmul.f32 0.5, %v815_v63  ;;  %v814_v9 = vadd.f32 1.0, %v2121_v3  ;;  %v2237_v27 = vpop.f32.mrb[41].mxu0 }
 0x17d   :  { %v636_v45 = vadd.f32 %v572_v18, %v2194_v22  ;;  %v573_v16 = vmul.f32 0.044715, %v509_v46  ;;  %v574_v20 = vmul.f32 0.044715, %v510_v50  ;;  %v876_v21 = vmul.f32 0.5, %v812_v51  ;;  %v2240_v8 = vpop.f32.mrb[42].mxu0 }
 0x17e   :  { %v575_v29 = vmul.f32 0.044715, %v511_v57  ;;  %v941_v30 = vmul.f32 %v877_v59, %v2019_v39  ;;  %v943_v7 = vmul.f32 %v879_v4, %v2032_v56  ;;  %v878_v35 = vmul.f32 0.5, %v814_v9  ;;  %v2244_v33 = vpop.f32.mrb[43].mxu0 }
 0x17f   :  { %v700_v49 = vmul.f32 0.7978846, %v636_v45  ;;  %v637_v3 = vadd.f32 %v573_v16, %v2207_v6  ;;  %v638_v31 = vadd.f32 %v574_v20, %v2210_v13  ;;  %v940_v0 = vmul.f32 %v876_v21, %v2013_v32 }
 0x180   :  { %v2249_v41 = vpop.eup %1616  ;;  %v639_v11 = vadd.f32 %v575_v29, %v2215_v62  ;;  %v997_v36 = vpack.c.bf16 %v943_v7, %v941_v30  ;;  %v942_v25 = vmul.f32 %v878_v35, %v2026_v47  ;;  %v2255_v39 = vadd.f32 %v2186_v14, %v1889_v23 }
 0x181   :  { %1624 = vtanh.f32 %v700_v49  ;;  %v701_v56 = vmul.f32 0.7978846, %v637_v3  ;;  %v702_v43 = vmul.f32 0.7978846, %v638_v31  ;;  %v2259_v63 = vadd.f32 %v2189_v10, %v1891_v24 }
 0x182   :  { %v2261_v18 = vpop.eup %1618  ;;  %v703_v32 = vmul.f32 0.7978846, %v639_v11  ;;  %1219 = vmatprep.mubr.bf16.mxu1 %v997_v36  ;;  %v996_v46 = vpack.c.bf16 %v942_v25, %v940_v0  ;;  %v448_v50 = vmul.f32 %v2255_v39, %v2255_v39  ;;  %v2267_v47 = vadd.f32 %v2196_v55, %v1889_v23 }
 0x183   :  { %v2269_v14 = vpop.eup %1620  ;;  %1626 = vtanh.f32 %v701_v56  ;;  %v449_v51 = vmul.f32 %v2259_v63, %v2259_v63  ;;  %v2275_v10 = vadd.f32 %v2202_v37, %v1891_v24  ;;  %v817_v57 = vadd.f32 1.0, %v2152_v26  ;;  %v2278_v59 = vpop.f32.mrb[44].mxu0 }
 0x184   :  { %v2280_v4 = vpop.eup %1622  ;;  %1628 = vtanh.f32 %v702_v43  ;;  %1220 = vmatmul.mubr.bf16.gmra.mrb[16].mxu1 %v996_v46  ;;  %v512_v55 = vmul.f32 %v448_v50, %v2255_v39  ;;  %v450_v9 = vmul.f32 %v2267_v47, %v2267_v47  ;;  %v819_v45 = vadd.f32 1.0, %v2174_v38  ;;  %v2286_v16 = vpop.f32.mrb[45].mxu0 }
 0x185   :  { %1630 = vtanh.f32 %v703_v32  ;;  %v513_v37 = vmul.f32 %v449_v51, %v2259_v63  ;;  %v451_v26 = vmul.f32 %v2275_v10, %v2275_v10  ;;  %v881_v20 = vmul.f32 0.5, %v817_v57  ;;  %v2291_v21 = vpop.f32.mrb[46].mxu0 }
 0x186   :  { %v576_v29 = vmul.f32 0.044715, %v512_v55  ;;  %v514_v30 = vmul.f32 %v450_v9, %v2267_v47  ;;  %v883_v7 = vmul.f32 0.5, %v819_v45  ;;  %v816_v35 = vadd.f32 1.0, %v2147_v15  ;;  %v2295_v49 = vpop.f32.mrb[47].mxu0 }
 0x187   :  { %v577_v38 = vmul.f32 0.044715, %v513_v37  ;;  %v515_v3 = vmul.f32 %v451_v26, %v2275_v10  ;;  %v945_v31 = vmul.f32 %v881_v20, %v2062_v58  ;;  %v818_v0 = vadd.f32 1.0, %v2159_v17 }
 0x188   :  { %v640_v11 = vadd.f32 %v576_v29, %v2255_v39  ;;  %v578_v36 = vmul.f32 0.044715, %v514_v30  ;;  %v947_v25 = vmul.f32 %v883_v7, %v2079_v60  ;;  %v880_v56 = vmul.f32 0.5, %v816_v35 }
 0x189   :  { %v641_v43 = vadd.f32 %v577_v38, %v2259_v63  ;;  %v579_v32 = vmul.f32 0.044715, %v515_v3  ;;  %v882_v46 = vmul.f32 0.5, %v818_v0  ;;  %v2305_v15 = vadd.f32 %v2233_v48, %v1889_v23 }
 0x18a   :  { %v704_v50 = vmul.f32 0.7978846, %v640_v11  ;;  %v642_v51 = vadd.f32 %v578_v36, %v2267_v47  ;;  %v999_v58 = vpack.c.bf16 %v947_v25, %v945_v31  ;;  %v944_v17 = vmul.f32 %v880_v56, %v2057_v34 }
 0x18b   :  { %v2309_v57 = vpop.eup %1624  ;;  %v705_v55 = vmul.f32 0.7978846, %v641_v43  ;;  %v643_v60 = vadd.f32 %v579_v32, %v2275_v10  ;;  %v946_v9 = vmul.f32 %v882_v46, %v2068_v44  ;;  %v452_v45 = vmul.f32 %v2305_v15, %v2305_v15  ;;  %v2315_v37 = vpop.f32.mrb[48].mxu0 }
 0x18c   :  { %1632 = vtanh.f32 %v704_v50  ;;  %v706_v48 = vmul.f32 0.7978846, %v642_v51  ;;  %1227 = vmatprep.mubr.bf16.mxu1 %v999_v58  ;;  %v2319_v26 = vadd.f32 %v2237_v27, %v1891_v24  ;;  %v2323_v34 = vadd.f32 %v2240_v8, %v1889_v23  ;;  %v2325_v20 = vpop.f32.mrb[49].mxu0 }
 0x18d   :  { %v2327_v29 = vpop.eup %1626  ;;  %1634 = vtanh.f32 %v705_v55  ;;  %v707_v44 = vmul.f32 0.7978846, %v643_v60  ;;  %v998_v30 = vpack.c.bf16 %v946_v9, %v944_v17  ;;  %v516_v7 = vmul.f32 %v452_v45, %v2305_v15  ;;  %v2330_v35 = vpop.f32.mrb[50].mxu0 }
 0x18e   :  { %v2332_v38 = vpop.eup %1628  ;;  %1636 = vtanh.f32 %v706_v48  ;;  %v453_v27 = vmul.f32 %v2319_v26, %v2319_v26  ;;  %v454_v8 = vmul.f32 %v2323_v34, %v2323_v34  ;;  %v2340_v3 = vadd.f32 %v2244_v33, %v1891_v24  ;;  %v2342_v31 = vpop.f32.mrb[51].mxu0 }
 0x18f   :  { %v2344_v0 = vpop.eup %1630  ;;  %1638 = vtanh.f32 %v707_v44  ;;  %1228 = vmatmul.mubr.bf16.gmra.mrb[20].mxu1 %v998_v30  ;;  %v580_v11 = vmul.f32 0.044715, %v516_v7  ;;  %v821_v36 = vadd.f32 1.0, %v2212_v40  ;;  %v823_v25 = vadd.f32 1.0, %v2224_v42 }
 0x190   :  { %v517_v56 = vmul.f32 %v453_v27, %v2319_v26  ;;  %v518_v43 = vmul.f32 %v454_v8, %v2323_v34  ;;  %v455_v32 = vmul.f32 %v2340_v3, %v2340_v3  ;;  %v820_v33 = vadd.f32 1.0, %v2198_v5 }
 0x191   :  { %v644_v46 = vadd.f32 %v580_v11, %v2305_v15  ;;  %v885_v50 = vmul.f32 0.5, %v821_v36  ;;  %v887_v51 = vmul.f32 0.5, %v823_v25  ;;  %v822_v58 = vadd.f32 1.0, %v2217_v2 }
 0x192   :  { %v581_v17 = vmul.f32 0.044715, %v517_v56  ;;  %v582_v55 = vmul.f32 0.044715, %v518_v43  ;;  %v519_v40 = vmul.f32 %v455_v32, %v2340_v3  ;;  %v884_v42 = vmul.f32 0.5, %v820_v33 }
 0x193   :  { %v708_v60 = vmul.f32 0.7978846, %v644_v46  ;;  %v949_v9 = vmul.f32 %v885_v50, %v2111_v53  ;;  %v951_v45 = vmul.f32 %v887_v51, %v2119_v54  ;;  %v886_v48 = vmul.f32 0.5, %v822_v58  ;;  %v2358_v44 = vpop.f32.mrb[52].mxu0 }
 0x194   :  { %v645_v5 = vadd.f32 %v581_v17, %v2319_v26  ;;  %v646_v30 = vadd.f32 %v582_v55, %v2323_v34  ;;  %v583_v7 = vmul.f32 0.044715, %v519_v40  ;;  %v948_v2 = vmul.f32 %v884_v42, %v2102_v28  ;;  %v2363_v27 = vpop.f32.mrb[53].mxu0 }
 0x195   :  { %1640 = vtanh.f32 %v708_v60  ;;  %v1001_v8 = vpack.c.bf16 %v951_v45, %v949_v9  ;;  %v950_v11 = vmul.f32 %v886_v48, %v2116_v61  ;;  %v2368_v53 = vadd.f32 %v2278_v59, %v1889_v23  ;;  %v2370_v54 = vpop.f32.mrb[54].mxu0 }
 0x196   :  { %v2372_v36 = vpop.eup %1632  ;;  %v709_v25 = vmul.f32 0.7978846, %v645_v5  ;;  %v710_v56 = vmul.f32 0.7978846, %v646_v30  ;;  %v647_v43 = vadd.f32 %v583_v7, %v2340_v3  ;;  %v2377_v28 = vadd.f32 %v2286_v16, %v1891_v24  ;;  %v2379_v32 = vpop.f32.mrb[55].mxu0 }
 0x197   :  { %v2381_v33 = vpop.eup %1634  ;;  %1235 = vmatprep.mubr.bf16.mxu1 %v1001_v8  ;;  %v1000_v61 = vpack.c.bf16 %v950_v11, %v948_v2  ;;  %v456_v59 = vmul.f32 %v2368_v53, %v2368_v53  ;;  %v2387_v46 = vadd.f32 %v2291_v21, %v1889_v23  ;;  %v2391_v50 = vadd.f32 %v2295_v49, %v1891_v24 }
 0x198   :  { %v2393_v51 = vpop.eup %1636  ;;  %1642 = vtanh.f32 %v709_v25  ;;  %v711_v16 = vmul.f32 0.7978846, %v647_v43  ;;  %v457_v58 = vmul.f32 %v2377_v28, %v2377_v28  ;;  %v825_v17 = vadd.f32 1.0, %v2261_v18 }
 0x199   :  { %v2398_v55 = vpop.eup %1638  ;;  %1644 = vtanh.f32 %v710_v56  ;;  %1236 = vmatmul.mubr.bf16.gmra.mrb[24].mxu1 %v1000_v61  ;;  %v520_v21 = vmul.f32 %v456_v59, %v2368_v53  ;;  %v458_v40 = vmul.f32 %v2387_v46, %v2387_v46  ;;  %v459_v49 = vmul.f32 %v2391_v50, %v2391_v50 }
 0x19a   :  { %1646 = vtanh.f32 %v711_v16  ;;  %v521_v42 = vmul.f32 %v457_v58, %v2377_v28  ;;  %v827_v60 = vadd.f32 1.0, %v2280_v4  ;;  %v889_v9 = vmul.f32 0.5, %v825_v17 }
 0x19b   :  { %v584_v45 = vmul.f32 0.044715, %v520_v21  ;;  %v522_v18 = vmul.f32 %v458_v40, %v2387_v46  ;;  %v523_v48 = vmul.f32 %v459_v49, %v2391_v50  ;;  %v824_v5 = vadd.f32 1.0, %v2249_v41  ;;  %v2410_v30 = vpop.f32.mrb[56].mxu0 }
 0x19c   :  { %v585_v7 = vmul.f32 0.044715, %v521_v42  ;;  %v891_v2 = vmul.f32 0.5, %v827_v60  ;;  %v953_v8 = vmul.f32 %v889_v9, %v2157_v1  ;;  %v826_v11 = vadd.f32 1.0, %v2269_v14  ;;  %v2414_v25 = vpop.f32.mrb[57].mxu0 }
 0x19d   :  { %v648_v4 = vadd.f32 %v584_v45, %v2368_v53  ;;  %v586_v56 = vmul.f32 0.044715, %v522_v18  ;;  %v587_v43 = vmul.f32 0.044715, %v523_v48  ;;  %v888_v61 = vmul.f32 0.5, %v824_v5  ;;  %v2417_v59 = vpop.f32.mrb[58].mxu0 }
 0x19e   :  { %v649_v16 = vadd.f32 %v585_v7, %v2377_v28  ;;  %v955_v41 = vmul.f32 %v891_v2, %v2168_v12  ;;  %v890_v58 = vmul.f32 0.5, %v826_v11  ;;  %v2423_v17 = vadd.f32 %v2315_v37, %v1889_v23  ;;  %v2425_v1 = vpop.f32.mrb[59].mxu0 }
 0x19f   :  { %v2427_v14 = vpop.eup %1640  ;;  %v712_v21 = vmul.f32 0.7978846, %v648_v4  ;;  %v650_v40 = vadd.f32 %v586_v56, %v2387_v46  ;;  %v651_v49 = vadd.f32 %v587_v43, %v2391_v50  ;;  %v952_v42 = vmul.f32 %v888_v61, %v2145_v52 }
 0x1a0   :  { %v713_v60 = vmul.f32 0.7978846, %v649_v16  ;;  %v1003_v9 = vpack.c.bf16 %v955_v41, %v953_v8  ;;  %v954_v12 = vmul.f32 %v890_v58, %v2162_v19  ;;  %v460_v45 = vmul.f32 %v2423_v17, %v2423_v17 }
 0x1a1   :  { %1648 = vtanh.f32 %v712_v21  ;;  %v714_v37 = vmul.f32 0.7978846, %v650_v40  ;;  %v715_v18 = vmul.f32 0.7978846, %v651_v49  ;;  %v2437_v48 = vadd.f32 %v2325_v20, %v1891_v24 }
 0x1a2   :  { %v2439_v5 = vpop.eup %1642  ;;  %1650 = vtanh.f32 %v713_v60  ;;  %1243 = vmatprep.mubr.bf16.mxu1 %v1003_v9  ;;  %v1002_v7 = vpack.c.bf16 %v954_v12, %v952_v42  ;;  %v524_v52 = vmul.f32 %v460_v45, %v2423_v17  ;;  %v2444_v19 = vadd.f32 %v2330_v35, %v1889_v23 }
 0x1a3   :  { %v2446_v2 = vpop.eup %1644  ;;  %1652 = vtanh.f32 %v714_v37  ;;  %v461_v8 = vmul.f32 %v2437_v48, %v2437_v48  ;;  %v2452_v20 = vadd.f32 %v2342_v31, %v1891_v24  ;;  %v829_v11 = vadd.f32 1.0, %v2327_v29  ;;  %v2455_v4 = vpop.f32.mrb[60].mxu0 }
 0x1a4   :  { %v2457_v56 = vpop.eup %1646  ;;  %1654 = vtanh.f32 %v715_v18  ;;  %1244 = vmatmul.mubr.bf16.gmra.mrb[28].mxu1 %v1002_v7  ;;  %v588_v35 = vmul.f32 0.044715, %v524_v52  ;;  %v462_v43 = vmul.f32 %v2444_v19, %v2444_v19  ;;  %v831_v61 = vadd.f32 1.0, %v2344_v0  ;;  %v2462_v16 = vpop.f32.mrb[61].mxu0 }
 0x1a5   :  { %v525_v41 = vmul.f32 %v461_v8, %v2437_v48  ;;  %v463_v31 = vmul.f32 %v2452_v20, %v2452_v20  ;;  %v893_v29 = vmul.f32 0.5, %v829_v11  ;;  %v828_v58 = vadd.f32 1.0, %v2309_v57  ;;  %v2468_v21 = vpop.f32.mrb[62].mxu0 }
 0x1a6   :  { %v652_v40 = vadd.f32 %v588_v35, %v2423_v17  ;;  %v526_v49 = vmul.f32 %v462_v43, %v2444_v19  ;;  %v895_v42 = vmul.f32 0.5, %v831_v61  ;;  %v830_v60 = vadd.f32 1.0, %v2332_v38  ;;  %v2473_v0 = vpop.f32.mrb[63].mxu0 }
 0x1a7   :  { %v589_v9 = vmul.f32 0.044715, %v525_v41  ;;  %v527_v12 = vmul.f32 %v463_v31, %v2452_v20  ;;  %v957_v45 = vmul.f32 %v893_v29, %v2207_v6  ;;  %v892_v37 = vmul.f32 0.5, %v828_v58 }
 0x1a8   :  { %v716_v18 = vmul.f32 0.7978846, %v652_v40  ;;  %v590_v7 = vmul.f32 0.044715, %v526_v49  ;;  %v959_v57 = vmul.f32 %v895_v42, %v2215_v62  ;;  %v894_v52 = vmul.f32 0.5, %v830_v60 }
 0x1a9   :  { %v653_v8 = vadd.f32 %v589_v9, %v2437_v48  ;;  %v591_v11 = vmul.f32 0.044715, %v527_v12  ;;  %v956_v35 = vmul.f32 %v892_v37, %v2194_v22  ;;  %v2482_v38 = vadd.f32 %v2358_v44, %v1889_v23 }
 0x1aa   :  { %1656 = vtanh.f32 %v716_v18  ;;  %v654_v43 = vadd.f32 %v590_v7, %v2444_v19  ;;  %v1005_v61 = vpack.c.bf16 %v959_v57, %v957_v45  ;;  %v958_v6 = vmul.f32 %v894_v52, %v2210_v13 }
 0x1ab   :  { %v2486_v41 = vpop.eup %1648  ;;  %v717_v31 = vmul.f32 0.7978846, %v653_v8  ;;  %v655_v62 = vadd.f32 %v591_v11, %v2452_v20  ;;  %v464_v29 = vmul.f32 %v2482_v38, %v2482_v38  ;;  %v2493_v22 = vadd.f32 %v2363_v27, %v1891_v24 }
 0x1ac   :  { %v2495_v44 = vpop.eup %1650  ;;  %v718_v58 = vmul.f32 0.7978846, %v654_v43  ;;  %1251 = vmatprep.mubr.bf16.mxu1 %v1005_v61  ;;  %v1004_v40 = vpack.c.bf16 %v958_v6, %v956_v35  ;;  %v2499_v13 = vadd.f32 %v2370_v54, %v1889_v23  ;;  %v2503_v49 = vadd.f32 %v2379_v32, %v1891_v24 }
 0x1ad   :  { %v2505_v42 = vpop.eup %1652  ;;  %1658 = vtanh.f32 %v717_v31  ;;  %v719_v60 = vmul.f32 0.7978846, %v655_v62  ;;  %v528_v27 = vmul.f32 %v464_v29, %v2482_v38  ;;  %v465_v9 = vmul.f32 %v2493_v22, %v2493_v22 }
 0x1ae   :  { %v2510_v12 = vpop.eup %1654  ;;  %1660 = vtanh.f32 %v718_v58  ;;  %1252 = vmatmul.mubr.bf16.gmra.mrb[32].mxu1 %v1004_v40  ;;  %v466_v54 = vmul.f32 %v2499_v13, %v2499_v13  ;;  %v467_v32 = vmul.f32 %v2503_v49, %v2503_v49  ;;  %v833_v45 = vadd.f32 1.0, %v2381_v33 }
 0x1af   :  { %1662 = vtanh.f32 %v719_v60  ;;  %v592_v37 = vmul.f32 0.044715, %v528_v27  ;;  %v529_v18 = vmul.f32 %v465_v9, %v2493_v22  ;;  %v835_v7 = vadd.f32 1.0, %v2398_v55 }
 0x1b0   :  { %v530_v57 = vmul.f32 %v466_v54, %v2499_v13  ;;  %v531_v52 = vmul.f32 %v467_v32, %v2503_v49  ;;  %v897_v8 = vmul.f32 0.5, %v833_v45  ;;  %v832_v11 = vadd.f32 1.0, %v2372_v36 }
 0x1b1   :  { %v656_v35 = vadd.f32 %v592_v37, %v2482_v38  ;;  %v593_v43 = vmul.f32 0.044715, %v529_v18  ;;  %v899_v61 = vmul.f32 0.5, %v835_v7  ;;  %v834_v6 = vadd.f32 1.0, %v2393_v51 }
 0x1b2   :  { %v594_v33 = vmul.f32 0.044715, %v530_v57  ;;  %v595_v31 = vmul.f32 0.044715, %v531_v52  ;;  %v961_v62 = vmul.f32 %v897_v8, %v2259_v63  ;;  %v896_v29 = vmul.f32 0.5, %v832_v11 }
 0x1b3   :  { %v720_v58 = vmul.f32 0.7978846, %v656_v35  ;;  %v657_v55 = vadd.f32 %v593_v43, %v2493_v22  ;;  %v963_v40 = vmul.f32 %v899_v61, %v2275_v10  ;;  %v898_v60 = vmul.f32 0.5, %v834_v6 }
 0x1b4   :  { %v2527_v27 = vpop.eup %1656  ;;  %v658_v36 = vadd.f32 %v594_v33, %v2499_v13  ;;  %v659_v9 = vadd.f32 %v595_v31, %v2503_v49  ;;  %v960_v54 = vmul.f32 %v896_v29, %v2255_v39  ;;  %v2534_v51 = vadd.f32 %v2410_v30, %v1889_v23 }
 0x1b5   :  { %1664 = vtanh.f32 %v720_v58  ;;  %v721_v63 = vmul.f32 0.7978846, %v657_v55  ;;  %v1007_v32 = vpack.c.bf16 %v963_v40, %v961_v62  ;;  %v962_v45 = vmul.f32 %v898_v60, %v2267_v47 }
 0x1b6   :  { %v722_v37 = vmul.f32 0.7978846, %v658_v36  ;;  %v723_v10 = vmul.f32 0.7978846, %v659_v9  ;;  %v468_v18 = vmul.f32 %v2534_v51, %v2534_v51  ;;  %v2541_v7 = vadd.f32 %v2414_v25, %v1891_v24 }
 0x1b7   :  { %v2543_v57 = vpop.eup %1658  ;;  %1666 = vtanh.f32 %v721_v63  ;;  %1259 = vmatprep.mubr.bf16.mxu1 %v1007_v32  ;;  %v1006_v39 = vpack.c.bf16 %v962_v45, %v960_v54  ;;  %v2547_v30 = vadd.f32 %v2417_v59, %v1889_v23  ;;  %v2551_v47 = vadd.f32 %v2425_v1, %v1891_v24 }
 0x1b8   :  { %v2553_v52 = vpop.eup %1660  ;;  %1668 = vtanh.f32 %v722_v37  ;;  %v532_v8 = vmul.f32 %v468_v18, %v2534_v51  ;;  %v469_v25 = vmul.f32 %v2541_v7, %v2541_v7  ;;  %v837_v11 = vadd.f32 1.0, %v2439_v5 }
 0x1b9   :  { %v2559_v35 = vpop.eup %1662  ;;  %1670 = vtanh.f32 %v723_v10  ;;  %1260 = vmatmul.mubr.bf16.gmra.mrb[36].mxu1 %v1006_v39  ;;  %v470_v59 = vmul.f32 %v2547_v30, %v2547_v30  ;;  %v471_v1 = vmul.f32 %v2551_v47, %v2551_v47  ;;  %v839_v43 = vadd.f32 1.0, %v2457_v56 }
 0x1ba   :  { %v596_v61 = vmul.f32 0.044715, %v532_v8  ;;  %v533_v6 = vmul.f32 %v469_v25, %v2541_v7  ;;  %v901_v33 = vmul.f32 0.5, %v837_v11  ;;  %v836_v31 = vadd.f32 1.0, %v2427_v14 }
 0x1bb   :  { %v534_v5 = vmul.f32 %v470_v59, %v2547_v30  ;;  %v535_v62 = vmul.f32 %v471_v1, %v2551_v47  ;;  %v903_v29 = vmul.f32 0.5, %v839_v43  ;;  %v838_v58 = vadd.f32 1.0, %v2446_v2 }
 0x1bc   :  { %v660_v55 = vadd.f32 %v596_v61, %v2534_v51  ;;  %v597_v40 = vmul.f32 0.044715, %v533_v6  ;;  %v965_v60 = vmul.f32 %v901_v33, %v2319_v26  ;;  %v900_v36 = vmul.f32 0.5, %v836_v31 }
 0x1bd   :  { %v598_v56 = vmul.f32 0.044715, %v534_v5  ;;  %v599_v9 = vmul.f32 0.044715, %v535_v62  ;;  %v967_v54 = vmul.f32 %v903_v29, %v2340_v3  ;;  %v902_v63 = vmul.f32 0.5, %v838_v58 }
 0x1be   :  { %v724_v32 = vmul.f32 0.7978846, %v660_v55  ;;  %v661_v14 = vadd.f32 %v597_v40, %v2541_v7  ;;  %v964_v45 = vmul.f32 %v900_v36, %v2305_v15  ;;  %v2578_v37 = vadd.f32 %v2455_v4, %v1889_v23 }
 0x1bf   :  { %v2580_v2 = vpop.eup %1664  ;;  %v662_v10 = vadd.f32 %v598_v56, %v2547_v30  ;;  %v663_v26 = vadd.f32 %v599_v9, %v2551_v47  ;;  %v1009_v18 = vpack.c.bf16 %v967_v54, %v965_v60  ;;  %v966_v39 = vmul.f32 %v902_v63, %v2323_v34 }
 0x1c0   :  { %1672 = vtanh.f32 %v724_v32  ;;  %v725_v3 = vmul.f32 0.7978846, %v661_v14  ;;  %v472_v8 = vmul.f32 %v2578_v37, %v2578_v37  ;;  %v2589_v15 = vadd.f32 %v2462_v16, %v1891_v24 }
 0x1c1   :  { %v2591_v4 = vpop.eup %1666  ;;  %v726_v25 = vmul.f32 0.7978846, %v662_v10  ;;  %v727_v11 = vmul.f32 0.7978846, %v663_v26  ;;  %1267 = vmatprep.mubr.bf16.mxu1 %v1009_v18  ;;  %v1008_v59 = vpack.c.bf16 %v966_v39, %v964_v45  ;;  %v2595_v1 = vadd.f32 %v2468_v21, %v1889_v23 }
 0x1c2   :  { %v2597_v34 = vpop.eup %1668  ;;  %1674 = vtanh.f32 %v725_v3  ;;  %v536_v43 = vmul.f32 %v472_v8, %v2578_v37  ;;  %v473_v61 = vmul.f32 %v2589_v15, %v2589_v15  ;;  %v2604_v16 = vadd.f32 %v2473_v0, %v1891_v24 }
 0x1c3   :  { %v1671_v6 = vpop.eup %1670  ;;  %1676 = vtanh.f32 %v726_v25  ;;  %1268 = vmatmul.mubr.bf16.gmra.mrb[40].mxu1 %v1008_v59  ;;  %v474_v33 = vmul.f32 %v2595_v1, %v2595_v1  ;;  %v841_v23 = vadd.f32 1.0, %v2495_v44  ;;  %v843_v21 = vadd.f32 1.0, %v2510_v12 }
 0x1c4   :  { %1678 = vtanh.f32 %v727_v11  ;;  %v600_v31 = vmul.f32 0.044715, %v536_v43  ;;  %v537_v5 = vmul.f32 %v473_v61, %v2589_v15  ;;  %v475_v62 = vmul.f32 %v2604_v16, %v2604_v16 }
 0x1c5   :  { %v538_v24 = vmul.f32 %v474_v33, %v2595_v1  ;;  %v905_v0 = vmul.f32 0.5, %v841_v23  ;;  %v907_v29 = vmul.f32 0.5, %v843_v21  ;;  %v840_v58 = vadd.f32 1.0, %v2486_v41 }
 0x1c6   :  { %v664_v55 = vadd.f32 %v600_v31, %v2578_v37  ;;  %v601_v40 = vmul.f32 0.044715, %v537_v5  ;;  %v539_v44 = vmul.f32 %v475_v62, %v2604_v16  ;;  %v842_v12 = vadd.f32 1.0, %v2505_v42 }
 0x1c7   :  { %v602_v60 = vmul.f32 0.044715, %v538_v24  ;;  %v969_v36 = vmul.f32 %v905_v0, %v2377_v28  ;;  %v971_v56 = vmul.f32 %v907_v29, %v2391_v50  ;;  %v904_v9 = vmul.f32 0.5, %v840_v58 }
 0x1c8   :  { %v728_v54 = vmul.f32 0.7978846, %v664_v55  ;;  %v665_v63 = vadd.f32 %v601_v40, %v2589_v15  ;;  %v603_v32 = vmul.f32 0.044715, %v539_v44  ;;  %v906_v14 = vmul.f32 0.5, %v842_v12 }
 0x1c9   :  { %v666_v41 = vadd.f32 %v602_v60, %v2595_v1  ;;  %v1011_v45 = vpack.c.bf16 %v971_v56, %v969_v36  ;;  %v968_v10 = vmul.f32 %v904_v9, %v2368_v53  ;;  %v845_v26 = vadd.f32 1.0, %v2543_v57 }
 0x1ca   :  { %v1673_v18 = vpop.eup %1672  ;;  %1680 = vtanh.f32 %v728_v54  ;;  %v729_v42 = vmul.f32 0.7978846, %v665_v63  ;;  %v667_v28 = vadd.f32 %v603_v32, %v2604_v16  ;;  %v970_v50 = vmul.f32 %v906_v14, %v2387_v46 }
 0x1cb   :  { %v730_v39 = vmul.f32 0.7978846, %v666_v41  ;;  %1275 = vmatprep.mubr.bf16.mxu1 %v1011_v45  ;;  %v847_v3 = vadd.f32 1.0, %v2559_v35  ;;  %v909_v8 = vmul.f32 0.5, %v845_v26  ;;  %v844_v25 = vadd.f32 1.0, %v2527_v27 }
 0x1cc   :  { %v1675_v11 = vpop.eup %1674  ;;  %1682 = vtanh.f32 %v729_v42  ;;  %v731_v59 = vmul.f32 0.7978846, %v667_v28  ;;  %v1010_v53 = vpack.c.bf16 %v970_v50, %v968_v10  ;;  %v846_v57 = vadd.f32 1.0, %v2553_v52 }
 0x1cd   :  { %v1677_v43 = vpop.eup %1676  ;;  %1684 = vtanh.f32 %v730_v39  ;;  %v911_v61 = vmul.f32 0.5, %v847_v3  ;;  %v973_v33 = vmul.f32 %v909_v8, %v2437_v48  ;;  %v908_v23 = vmul.f32 0.5, %v844_v25 }
 0x1ce   :  { %v1679_v46 = vpop.eup %1678  ;;  %1686 = vtanh.f32 %v731_v59  ;;  %1276 = vmatmul.mubr.bf16.gmra.mrb[44].mxu1 %v1010_v53  ;;  %v910_v21 = vmul.f32 0.5, %v846_v57  ;;  %v849_v35 = vadd.f32 1.0, %v2591_v4  ;;  %v851_v31 = vadd.f32 1.0, %v1671_v6  ;;  %v2651_v53 = vld [vmem:[%s2704_s4] ss:$0 sm:$0xff]  ;;  %s1790_s4 = smov [#allocation8]  }
 0x1cf   :  { %v975_v27 = vmul.f32 %v911_v61, %v2452_v20  ;;  %v972_v5 = vmul.f32 %v908_v23, %v2423_v17  ;;  %v848_v62 = vadd.f32 1.0, %v2580_v2  ;;  %v850_v52 = vadd.f32 1.0, %v2597_v34  ;;  %s1353_s10 = sshll.u32 %s1790_s4, 4  ;;  %s1354_s10 = int_to_ptr.vmem [resolvable:$true] %s1353_s10 }
 0x1d0   :  { %v974_v24 = vmul.f32 %v910_v21, %v2444_v19  ;;  %v913_v0 = vmul.f32 0.5, %v849_v35  ;;  %v915_v48 = vmul.f32 0.5, %v851_v31  ;;  %v853_v29 = vadd.f32 1.0, %v1675_v11  ;;  %s1754_s11 = scalar_lea.vmem %s1354_s10, 4096  ;;  %p1759_p11 = scmp.lt.s32.totalorder %s1354_s10, %s1354_s10 }
 0x1d1   :  { %v1013_v58 = vpack.c.bf16 %v975_v27, %v973_v33  ;;  %v912_v55 = vmul.f32 0.5, %v848_v62  ;;  %v914_v40 = vmul.f32 0.5, %v850_v52  ;;  %v855_v44 = vadd.f32 1.0, %v1679_v46  ;;  %p1755_p10 = scmp.ne.s32.totalorder %s1354_s10, %s1754_s11  ;;  %p1760_p12 = scmp.lt.s32.totalorder %s1754_s11, %s1754_s11 }
 0x1d2   :  { %v1012_v12 = vpack.c.bf16 %v974_v24, %v972_v5  ;;  %v977_v4 = vmul.f32 %v913_v0, %v2493_v22  ;;  %v979_v20 = vmul.f32 %v915_v48, %v2503_v49  ;;  %v917_v6 = vmul.f32 0.5, %v853_v29 }
 0x1d3   :  { %1283 = vmatprep.mubr.bf16.mxu1 %v1013_v58  ;;  %v976_v17 = vmul.f32 %v912_v55, %v2482_v38  ;;  %v978_v2 = vmul.f32 %v914_v40, %v2499_v13  ;;  %v919_v34 = vmul.f32 0.5, %v855_v44  ;;  %v852_v19 = vadd.f32 1.0, %v1673_v18  ;;  %p1761_p13 = por %p1760_p12, %p1759_p11 }
 0x1d4   :  { %v1681_v60 = vpop.eup %1680  ;;  %v1015_v36 = vpack.c.bf16 %v979_v20, %v977_v4  ;;  %v981_v56 = vmul.f32 %v917_v6, %v2541_v7  ;;  %v854_v9 = vadd.f32 1.0, %v1677_v43 }
 0x1d5   :  { %v1014_v54 = vpack.c.bf16 %v978_v2, %v976_v17  ;;  %v983_v63 = vmul.f32 %v919_v34, %v2551_v47  ;;  %v916_v32 = vmul.f32 0.5, %v852_v19  ;;  %v856_v22 = vadd.f32 1.0, %v1681_v60  ;;  %p1762_p0 = pnand %p1761_p13, %p1755_p10 }
 0x1d6   :  { %v1683_v14 = vpop.eup %1682  ;;  %1284 = vmatmul.mubr.bf16.gmra.mrb[48].mxu1 %v1012_v12  ;;  %v918_v49 = vmul.f32 0.5, %v854_v9 }
 0x1d7   :  { %v1685_v41 = vpop.eup %1684  ;;  %1291 = vmatprep.mubr.bf16.mxu1 %v1015_v36  ;;  %v1017_v38 = vpack.c.bf16 %v983_v63, %v981_v56  ;;  %v857_v45 = vadd.f32 1.0, %v1683_v14  ;;  %v980_v10 = vmul.f32 %v916_v32, %v2534_v51  ;;  %v920_v7 = vmul.f32 0.5, %v856_v22 }
 0x1d8   :  { %v1687_v13 = vpop.eup %1686  ;;  %v982_v26 = vmul.f32 %v918_v49, %v2547_v30  ;;  %v858_v18 = vadd.f32 1.0, %v1685_v41 }
 0x1d9   :  { %v859_v42 = vadd.f32 1.0, %v1687_v13  ;;  %v921_v28 = vmul.f32 0.5, %v857_v45  ;;  %v984_v3 = vmul.f32 %v920_v7, %v2578_v37 }
 0x1da   :  { %v1016_v50 = vpack.c.bf16 %v982_v26, %v980_v10  ;;  %v922_v47 = vmul.f32 0.5, %v858_v18 }
 0x1db   :  { %v923_v39 = vmul.f32 0.5, %v859_v42  ;;  %v985_v25 = vmul.f32 %v921_v28, %v2589_v15 }
 0x1dc   :  { %v986_v8 = vmul.f32 %v922_v47, %v2595_v1 }
 0x1dd   :  { %v987_v11 = vmul.f32 %v923_v39, %v2604_v16 }
 0x1de   :  { %1292 = vmatmul.mubr.bf16.gmra.mrb[52].mxu1 %v1014_v54  ;;  %v1018_v59 = vpack.c.bf16 %v986_v8, %v984_v3 }
 0x1df   :  { %1299 = vmatprep.mubr.bf16.mxu1 %v1017_v38  ;;  %v1019_v51 = vpack.c.bf16 %v987_v11, %v985_v25 }
 0x1e6   :  { %1300 = vmatmul.mubr.bf16.gmra.mrb[56].mxu1 %v1016_v50 }
 0x1e7   :  { %1307 = vmatprep.mubr.bf16.mxu1 %v1019_v51 }
 0x1ee   :  { %1308 = vmatmul.mubr.bf16.gmra.mrb[60].mxu1 %v1018_v59 }
 0x22d   :  { %v1415_v30 = vpop.f32.mrb[0].mxu1 }
 0x22e   :  { %v1416_v37 = vpop.f32.mrb[1].mxu1 }
 0x22f   :  { %v1417_v57 = vadd.f32 %v1416_v37, %v1415_v30  ;;  %v1418_v1 = vpop.f32.mrb[2].mxu1 }
 0x230   :  { %v1419_v43 = vpop.f32.mrb[3].mxu1 }
 0x231   :  { %v1190_v15 = vadd.f32 %v1417_v57, %v2651_v53  ;;  %v1420_v16 = vadd.f32 %v1419_v43, %v1418_v1 }
 0x233   :  { %1316 = vst [vmem:[#allocation8] sm:$0xff] %v1190_v15  ;;  %v1193_v61 = vadd.f32 %v1420_v16, %v2651_v53 }
 0x235   :  { %1317 = vst [vmem:[#allocation8 + $0x8] sm:$0xff] %v1193_v61 }
 0x238   :  { %v1421_v33 = vpop.f32.mrb[4].mxu1 }
 0x239   :  { %v1422_v23 = vpop.f32.mrb[5].mxu1 }
 0x23a   :  { %v1423_v46 = vadd.f32 %v1422_v23, %v1421_v33  ;;  %v1424_v21 = vpop.f32.mrb[6].mxu1 }
 0x23b   :  { %v1425_v35 = vpop.f32.mrb[7].mxu1 }
 0x23c   :  { %v1198_v31 = vadd.f32 %v1423_v46, %v2651_v53  ;;  %v1426_v27 = vadd.f32 %v1425_v35, %v1424_v21 }
 0x23e   :  { %1318 = vst [vmem:[#allocation8 + $0x10] sm:$0xff] %v1198_v31  ;;  %v1201_v5 = vadd.f32 %v1426_v27, %v2651_v53 }
 0x240   :  { %1319 = vst [vmem:[#allocation8 + $0x18] sm:$0xff] %v1201_v5 }
 0x242   :  { %v1427_v62 = vpop.f32.mrb[8].mxu1 }
 0x243   :  { %v1428_v52 = vpop.f32.mrb[9].mxu1 }
 0x244   :  { %v1429_v24 = vadd.f32 %v1428_v52, %v1427_v62  ;;  %v1430_v0 = vpop.f32.mrb[10].mxu1 }
 0x245   :  { %v1431_v48 = vpop.f32.mrb[11].mxu1 }
 0x246   :  { %v1206_v29 = vadd.f32 %v1429_v24, %v2651_v53  ;;  %v1432_v58 = vadd.f32 %v1431_v48, %v1430_v0 }
 0x248   :  { %1320 = vst [vmem:[#allocation8 + $0x20] sm:$0xff] %v1206_v29  ;;  %v1209_v55 = vadd.f32 %v1432_v58, %v2651_v53 }
 0x24a   :  { %1321 = vst [vmem:[#allocation8 + $0x28] sm:$0xff] %v1209_v55 }
 0x24d   :  { %v1433_v40 = vpop.f32.mrb[12].mxu1 }
 0x24e   :  { %v1434_v44 = vpop.f32.mrb[13].mxu1 }
 0x24f   :  { %v1435_v12 = vadd.f32 %v1434_v44, %v1433_v40  ;;  %v1436_v4 = vpop.f32.mrb[14].mxu1 }
 0x250   :  { %v1437_v20 = vpop.f32.mrb[15].mxu1 }
 0x251   :  { %v1214_v6 = vadd.f32 %v1435_v12, %v2651_v53  ;;  %v1438_v17 = vadd.f32 %v1437_v20, %v1436_v4 }
 0x253   :  { %1322 = vst [vmem:[#allocation8 + $0x30] sm:$0xff] %v1214_v6  ;;  %v1217_v2 = vadd.f32 %v1438_v17, %v2651_v53 }
 0x255   :  { %1323 = vst [vmem:[#allocation8 + $0x38] sm:$0xff] %v1217_v2 }
 0x257   :  { %v1439_v34 = vpop.f32.mrb[16].mxu1 }
 0x258   :  { %v1440_v19 = vpop.f32.mrb[17].mxu1 }
 0x259   :  { %v1441_v60 = vadd.f32 %v1440_v19, %v1439_v34  ;;  %v1442_v36 = vpop.f32.mrb[18].mxu1 }
 0x25a   :  { %v1443_v56 = vpop.f32.mrb[19].mxu1 }
 0x25b   :  { %v1222_v9 = vadd.f32 %v1441_v60, %v2651_v53  ;;  %v1444_v54 = vadd.f32 %v1443_v56, %v1442_v36 }
 0x25d   :  { %1324 = vst [vmem:[#allocation8 + $0x40] sm:$0xff] %v1222_v9  ;;  %v1225_v63 = vadd.f32 %v1444_v54, %v2651_v53 }
 0x25f   :  { %1325 = vst [vmem:[#allocation8 + $0x48] sm:$0xff] %v1225_v63 }
 0x262   :  { %v1445_v32 = vpop.f32.mrb[20].mxu1 }
 0x263   :  { %v1446_v22 = vpop.f32.mrb[21].mxu1 }
 0x264   :  { %v1447_v14 = vadd.f32 %v1446_v22, %v1445_v32  ;;  %v1448_v49 = vpop.f32.mrb[22].mxu1 }
 0x265   :  { %v1449_v41 = vpop.f32.mrb[23].mxu1 }
 0x266   :  { %v1230_v38 = vadd.f32 %v1447_v14, %v2651_v53  ;;  %v1450_v45 = vadd.f32 %v1449_v41, %v1448_v49 }
 0x268   :  { %1326 = vst [vmem:[#allocation8 + $0x50] sm:$0xff] %v1230_v38  ;;  %v1233_v13 = vadd.f32 %v1450_v45, %v2651_v53 }
 0x26a   :  { %1327 = vst [vmem:[#allocation8 + $0x58] sm:$0xff] %v1233_v13 }
 0x26c   :  { %v1451_v10 = vpop.f32.mrb[24].mxu1 }
 0x26d   :  { %v1452_v26 = vpop.f32.mrb[25].mxu1 }
 0x26e   :  { %v1453_v18 = vadd.f32 %v1452_v26, %v1451_v10  ;;  %v1454_v7 = vpop.f32.mrb[26].mxu1 }
 0x26f   :  { %v1455_v42 = vpop.f32.mrb[27].mxu1 }
 0x270   :  { %v1238_v28 = vadd.f32 %v1453_v18, %v2651_v53  ;;  %v1456_v50 = vadd.f32 %v1455_v42, %v1454_v7 }
 0x272   :  { %1328 = vst [vmem:[#allocation8 + $0x60] sm:$0xff] %v1238_v28  ;;  %v1241_v47 = vadd.f32 %v1456_v50, %v2651_v53 }
 0x274   :  { %1329 = vst [vmem:[#allocation8 + $0x68] sm:$0xff] %v1241_v47 }
 0x277   :  { %v1457_v39 = vpop.f32.mrb[28].mxu1 }
 0x278   :  { %v1458_v3 = vpop.f32.mrb[29].mxu1 }
 0x279   :  { %v1459_v8 = vadd.f32 %v1458_v3, %v1457_v39  ;;  %v1460_v25 = vpop.f32.mrb[30].mxu1 }
 0x27a   :  { %v1461_v11 = vpop.f32.mrb[31].mxu1 }
 0x27b   :  { %v1246_v59 = vadd.f32 %v1459_v8, %v2651_v53  ;;  %v1462_v51 = vadd.f32 %v1461_v11, %v1460_v25 }
 0x27d   :  { %1330 = vst [vmem:[#allocation8 + $0x70] sm:$0xff] %v1246_v59  ;;  %v1249_v30 = vadd.f32 %v1462_v51, %v2651_v53 }
 0x27f   :  { %1331 = vst [vmem:[#allocation8 + $0x78] sm:$0xff] %v1249_v30 }
 0x281   :  { %v1463_v37 = vpop.f32.mrb[32].mxu1 }
 0x282   :  { %v1464_v57 = vpop.f32.mrb[33].mxu1 }
 0x283   :  { %v1465_v1 = vadd.f32 %v1464_v57, %v1463_v37  ;;  %v1466_v43 = vpop.f32.mrb[34].mxu1 }
 0x284   :  { %v1467_v15 = vpop.f32.mrb[35].mxu1 }
 0x285   :  { %v1254_v16 = vadd.f32 %v1465_v1, %v2651_v53  ;;  %v1468_v61 = vadd.f32 %v1467_v15, %v1466_v43 }
 0x287   :  { %1332 = vst [vmem:[#allocation8 + $0x80] sm:$0xff] %v1254_v16  ;;  %v1257_v33 = vadd.f32 %v1468_v61, %v2651_v53 }
 0x289   :  { %1333 = vst [vmem:[#allocation8 + $0x88] sm:$0xff] %v1257_v33 }
 0x28c   :  { %v1469_v23 = vpop.f32.mrb[36].mxu1 }
 0x28d   :  { %v1470_v46 = vpop.f32.mrb[37].mxu1 }
 0x28e   :  { %v1471_v21 = vadd.f32 %v1470_v46, %v1469_v23  ;;  %v1472_v35 = vpop.f32.mrb[38].mxu1 }
 0x28f   :  { %v1473_v31 = vpop.f32.mrb[39].mxu1 }
 0x290   :  { %v1262_v27 = vadd.f32 %v1471_v21, %v2651_v53  ;;  %v1474_v5 = vadd.f32 %v1473_v31, %v1472_v35 }
 0x292   :  { %1334 = vst [vmem:[#allocation8 + $0x90] sm:$0xff] %v1262_v27  ;;  %v1265_v62 = vadd.f32 %v1474_v5, %v2651_v53 }
 0x294   :  { %1335 = vst [vmem:[#allocation8 + $0x98] sm:$0xff] %v1265_v62 }
 0x296   :  { %v1475_v52 = vpop.f32.mrb[40].mxu1 }
 0x297   :  { %v1476_v24 = vpop.f32.mrb[41].mxu1 }
 0x298   :  { %v1477_v0 = vadd.f32 %v1476_v24, %v1475_v52  ;;  %v1478_v48 = vpop.f32.mrb[42].mxu1 }
 0x299   :  { %v1479_v29 = vpop.f32.mrb[43].mxu1 }
 0x29a   :  { %v1270_v58 = vadd.f32 %v1477_v0, %v2651_v53  ;;  %v1480_v55 = vadd.f32 %v1479_v29, %v1478_v48 }
 0x29c   :  { %1336 = vst [vmem:[#allocation8 + $0xa0] sm:$0xff] %v1270_v58  ;;  %v1273_v40 = vadd.f32 %v1480_v55, %v2651_v53 }
 0x29e   :  { %1337 = vst [vmem:[#allocation8 + $0xa8] sm:$0xff] %v1273_v40 }
 0x2a1   :  { %v1481_v44 = vpop.f32.mrb[44].mxu1 }
 0x2a2   :  { %v1482_v12 = vpop.f32.mrb[45].mxu1 }
 0x2a3   :  { %v1483_v4 = vadd.f32 %v1482_v12, %v1481_v44  ;;  %v1484_v20 = vpop.f32.mrb[46].mxu1 }
 0x2a4   :  { %v1485_v6 = vpop.f32.mrb[47].mxu1 }
 0x2a5   :  { %v1278_v17 = vadd.f32 %v1483_v4, %v2651_v53  ;;  %v1486_v2 = vadd.f32 %v1485_v6, %v1484_v20 }
 0x2a7   :  { %1338 = vst [vmem:[#allocation8 + $0xb0] sm:$0xff] %v1278_v17  ;;  %v1281_v34 = vadd.f32 %v1486_v2, %v2651_v53 }
 0x2a9   :  { %1339 = vst [vmem:[#allocation8 + $0xb8] sm:$0xff] %v1281_v34  ;;  %v1487_v19 = vpop.f32.mrb[48].mxu1 }
 0x2aa   :  { %v1488_v60 = vpop.f32.mrb[49].mxu1 }
 0x2ab   :  { %v1489_v36 = vadd.f32 %v1488_v60, %v1487_v19  ;;  %v1490_v56 = vpop.f32.mrb[50].mxu1 }
 0x2ac   :  { %v1491_v9 = vpop.f32.mrb[51].mxu1 }
 0x2ad   :  { %v1286_v54 = vadd.f32 %v1489_v36, %v2651_v53  ;;  %v1492_v63 = vadd.f32 %v1491_v9, %v1490_v56 }
 0x2af   :  { %1340 = vst [vmem:[#allocation8 + $0xc0] sm:$0xff] %v1286_v54  ;;  %v1289_v32 = vadd.f32 %v1492_v63, %v2651_v53 }
 0x2b1   :  { %1341 = vst [vmem:[#allocation8 + $0xc8] sm:$0xff] %v1289_v32  ;;  %v1493_v22 = vpop.f32.mrb[52].mxu1 }
 0x2b2   :  { %v1494_v14 = vpop.f32.mrb[53].mxu1 }
 0x2b3   :  { %v1495_v49 = vadd.f32 %v1494_v14, %v1493_v22  ;;  %v1496_v41 = vpop.f32.mrb[54].mxu1 }
 0x2b4   :  { %v1497_v38 = vpop.f32.mrb[55].mxu1 }
 0x2b5   :  { %v1294_v45 = vadd.f32 %v1495_v49, %v2651_v53  ;;  %v1498_v13 = vadd.f32 %v1497_v38, %v1496_v41 }
 0x2b7   :  { %1342 = vst [vmem:[#allocation8 + $0xd0] sm:$0xff] %v1294_v45  ;;  %v1297_v10 = vadd.f32 %v1498_v13, %v2651_v53 }
 0x2b9   :  { %1343 = vst [vmem:[#allocation8 + $0xd8] sm:$0xff] %v1297_v10  ;;  %v1499_v26 = vpop.f32.mrb[56].mxu1 }
 0x2ba   :  { %v1500_v18 = vpop.f32.mrb[57].mxu1 }
 0x2bb   :  { %v1501_v7 = vadd.f32 %v1500_v18, %v1499_v26  ;;  %v1502_v42 = vpop.f32.mrb[58].mxu1 }
 0x2bc   :  { %v1503_v28 = vpop.f32.mrb[59].mxu1 }
 0x2bd   :  { %v1302_v50 = vadd.f32 %v1501_v7, %v2651_v53  ;;  %v1504_v47 = vadd.f32 %v1503_v28, %v1502_v42 }
 0x2bf   :  { %1344 = vst [vmem:[#allocation8 + $0xe0] sm:$0xff] %v1302_v50  ;;  %v1305_v39 = vadd.f32 %v1504_v47, %v2651_v53 }
 0x2c1   :  { %1345 = vst [vmem:[#allocation8 + $0xe8] sm:$0xff] %v1305_v39  ;;  %v1505_v3 = vpop.f32.mrb[60].mxu1 }
 0x2c2   :  { %v1506_v8 = vpop.f32.mrb[61].mxu1 }
 0x2c3   :  { %v1507_v25 = vadd.f32 %v1506_v8, %v1505_v3  ;;  %v1508_v11 = vpop.f32.mrb[62].mxu1 }
 0x2c4   :  { %v1509_v59 = vpop.f32.mrb[63].mxu1 }
 0x2c5   :  { %v1310_v51 = vadd.f32 %v1507_v25, %v2651_v53  ;;  %v1510_v30 = vadd.f32 %v1509_v59, %v1508_v11 }
 0x2c7   :  { %1346 = vst [vmem:[#allocation8 + $0xf0] sm:$0xff] %v1310_v51  ;;  %v1313_v37 = vadd.f32 %v1510_v30, %v2651_v53 }
 0x2c9   :  { %1347 = vst [vmem:[#allocation8 + $0xf8] sm:$0xff] %v1313_v37 }
 0x2ca   :  { %1765 = shalt.err (!%p1762_p0)
}
 0x2cb   :  { %s1766_s14 = scalar_lea.hbm %s2705_s5, 4096 }
 0x2cc   :  { %p1767_p1 = scmp.ne.s32.totalorder %s2705_s5, %s1766_s14  ;;  %p1770_p2 = scmp.lt.u32.totalorder %s1766_s14, %s2705_s5 }
 0x2ce   :  { %p1772_p3 = pnand %p1770_p2, %p1767_p1 }
 0x2d0   :  { %1775 = shalt.err (!%p1772_p3)
}
 0x2d1   :  { %1359 = dma.vmem_to_hbm [thread:$0]  %s1354_s10, 4096, %s2705_s5, [#allocation4], %s1784_s30, %s1784_s30, %s1785_s6  }
 0x2d2   :  { %1780 = dma.done.wait [#allocation4], 4096  }
 0x2d3   :  { %1781 = vsyncadd [#allocation4], 4294963200 }
 0x2d4   :  { %1363 = vsyncpa [#allocation3], 1 }
 0x2d5   :  { %1364 = vsyncpa [#allocation6], 1 }
 0x2d6   :  { %1365 = vsyncpa [#allocation4], 1 }

</bundles_post_ra>
